<compile_context>
chip_gen: v7x
topology: tpu7x:2x2x1
jax: 0.10.0
libtpu: 0.0.40
codegen_flags: <defaults>
</compile_context>

<pallas_src>
import jax
import jax.numpy as jnp
from jax.experimental import pallas as pl
from jax.experimental.pallas import tpu as pltpu

EPS = 1e-5                      # BatchNorm3d default eps
VMEM_LIMIT = 40 * 1024 * 1024   # explicit: > 32 MiB default, < v7x 64 MiB physical


def _ru(x, m):
    return (x + m - 1) // m * m


def _pick_tm(M, K):
    """M-tile: target a ~1 MiB bf16 A tile per grid step, within [128, 1024]."""
    budget = (1 << 20) // max(2 * K, 2)
    tm = 128
    while tm * 2 <= min(budget, 1024):
        tm *= 2
    return min(tm, _ru(M, 8))


# -------------------------------------------- matmul + fused BN statistics ----
def _mm_stats_kernel(a_ref, b_ref, o_ref, s_ref, q_ref, acc_s, acc_q):
    i = pl.program_id(1)

    @pl.when(i == 0)
    def _init():
        acc_s[...] = jnp.zeros_like(acc_s)
        acc_q[...] = jnp.zeros_like(acc_q)

    y = jnp.dot(a_ref[...], b_ref[...], preferred_element_type=jnp.float32)
    o_ref[...] = y.astype(o_ref.dtype)
    acc_s[...] += jnp.sum(y, axis=0, keepdims=True)
    acc_q[...] += jnp.sum(y * y, axis=0, keepdims=True)

    @pl.when(i == pl.num_programs(1) - 1)
    def _done():
        s_ref[...] = jnp.broadcast_to(acc_s[...], s_ref.shape)
        q_ref[...] = jnp.broadcast_to(acc_q[...], q_ref.shape)


def pallas_matmul_stats(a, b):
    """(M,K)@(K,N): bf16 MXU matmul (f32 accumulation) whose epilogue also emits
    the per-output-column sum / sum-of-squares (fused BatchNorm statistics).
    Returns (out[Mp,N] bf16, zero rows padded at the end, col_sum, col_sumsq)."""
    M, K = a.shape
    K2, N = b.shape
    assert K == K2
    Kp = max(K, 8)
    tm = _pick_tm(M, K)
    mb = -(-M // tm)
    ncore = 2 if mb >= 2 else 1          # leading parallel axis -> v7x megacore
    mb2 = -(-mb // ncore)
    Mp = ncore * mb2 * tm

    a = a.astype(jnp.bfloat16)
    b = b.astype(jnp.bfloat16)
    if Mp != M or Kp != K:               # zero rows: contribute 0 to sums
        a = jnp.pad(a, ((0, Mp - M), (0, Kp - K)))
    if Kp != K:
        b = jnp.pad(b, ((0, Kp - K), (0, 0)))

    out, s8, q8 = pl.pallas_call(
        _mm_stats_kernel,
        out_shape=(jax.ShapeDtypeStruct((Mp, N), jnp.bfloat16),
                   jax.ShapeDtypeStruct((ncore, 8, N), jnp.float32),
                   jax.ShapeDtypeStruct((ncore, 8, N), jnp.float32)),
        grid_spec=pltpu.PrefetchScalarGridSpec(
            num_scalar_prefetch=0,
            grid=(ncore, mb2),
            in_specs=[
                pl.BlockSpec((tm, Kp), lambda c, i: (c * mb2 + i, 0)),
                pl.BlockSpec((Kp, N), lambda c, i: (0, 0)),   # weight VMEM-resident
            ],
            out_specs=[
                pl.BlockSpec((tm, N), lambda c, i: (c * mb2 + i, 0)),
                pl.BlockSpec((1, 8, N), lambda c, i: (c, 0, 0)),
                pl.BlockSpec((1, 8, N), lambda c, i: (c, 0, 0)),
            ],
            scratch_shapes=[pltpu.VMEM((1, N), jnp.float32),
                            pltpu.VMEM((1, N), jnp.float32)]),
        compiler_params=pltpu.CompilerParams(
            dimension_semantics=("parallel", "arbitrary"),
            vmem_limit_bytes=VMEM_LIMIT),
    )(a, b)
    return out, jnp.sum(s8[:, 0, :], axis=0), jnp.sum(q8[:, 0, :], axis=0)


# ------------------------------------------ matmul with fused bias + ReLU -----
def _mm_bias_relu_kernel(a_ref, b_ref, bias_ref, o_ref):
    y = jnp.dot(a_ref[...], b_ref[...], preferred_element_type=jnp.float32)
    o_ref[...] = jnp.maximum(y + bias_ref[...], 0.0).astype(o_ref.dtype)


def pallas_matmul_bias_relu(a, b, bias):
    """relu((M,K)@(K,N) + bias) with bias/ReLU fused into the MXU epilogue."""
    M, K = a.shape
    _, N = b.shape
    Kp = max(K, 8)
    tm = _pick_tm(M, K)
    Mp = _ru(M, tm)
    a = a.astype(jnp.bfloat16)
    b = b.astype(jnp.bfloat16)
    if Mp != M or Kp != K:
        a = jnp.pad(a, ((0, Mp - M), (0, Kp - K)))
    if Kp != K:
        b = jnp.pad(b, ((0, Kp - K), (0, 0)))
    bias2 = bias.reshape(1, N).astype(jnp.float32)

    out = pl.pallas_call(
        _mm_bias_relu_kernel,
        out_shape=jax.ShapeDtypeStruct((Mp, N), jnp.bfloat16),
        grid_spec=pltpu.PrefetchScalarGridSpec(
            num_scalar_prefetch=0,
            grid=(Mp // tm,),
            in_specs=[pl.BlockSpec((tm, Kp), lambda i: (i, 0)),
                      pl.BlockSpec((Kp, N), lambda i: (0, 0)),
                      pl.BlockSpec((1, N), lambda i: (0, 0))],
            out_specs=pl.BlockSpec((tm, N), lambda i: (i, 0))),
        compiler_params=pltpu.CompilerParams(
            dimension_semantics=("parallel",),
            vmem_limit_bytes=VMEM_LIMIT),
    )(a, b, bias2)
    return out[:M]


# ----------------------------------- fused scale*x + shift -> ReLU (BN apply) --
def _scale_shift_relu_kernel(x_ref, s_ref, b_ref, o_ref):
    o_ref[...] = jnp.maximum(
        x_ref[...].astype(jnp.float32) * s_ref[...] + b_ref[...], 0.0
    ).astype(o_ref.dtype)


def pallas_scale_shift_relu(x2d, scale, shift):
    """y = relu(x*scale + shift), scale/shift broadcast over rows.
    For C < 128 rows are repacked to a lane-dense (M*C/128, 128) view so the
    stores are unmasked; compute stays f32 (v5e-friendly), storage bf16."""
    M, C = x2d.shape
    s = scale.reshape(1, C).astype(jnp.float32)
    b = shift.reshape(1, C).astype(jnp.float32)
    g = 128 // C if (C < 128 and 128 % C == 0) else 1
    if g > 1 and M % g == 0:
        xd = x2d.reshape(M // g, C * g)
        s = jnp.tile(s, (1, g))
        b = jnp.tile(b, (1, g))
    else:
        g = 1
        xd = x2d
    Md, Cd = xd.shape
    tr = min(1024, _ru(Md, 8))
    Mp = _ru(Md, tr)
    if Mp != Md:
        xd = jnp.pad(xd, ((0, Mp - Md), (0, 0)))

    out = pl.pallas_call(
        _scale_shift_relu_kernel,
        out_shape=jax.ShapeDtypeStruct((Mp, Cd), jnp.bfloat16),
        grid_spec=pltpu.PrefetchScalarGridSpec(
            num_scalar_prefetch=0,
            grid=(Mp // tr,),
            in_specs=[pl.BlockSpec((tr, Cd), lambda i: (i, 0)),
                      pl.BlockSpec((1, Cd), lambda i: (0, 0)),
                      pl.BlockSpec((1, Cd), lambda i: (0, 0))],
            out_specs=pl.BlockSpec((tr, Cd), lambda i: (i, 0))),
        compiler_params=pltpu.CompilerParams(
            dimension_semantics=("parallel",),
            vmem_limit_bytes=VMEM_LIMIT),
    )(xd, s, b)
    out = out[:Md]
    if g > 1:
        out = out.reshape(M, C)
    return out


# ------------------------------------------------------------- NN helpers ----
def _im2col(x, ksize, padding):
    """x: (N,D,H,W,Cin) bf16 -> (M, kd*kh*kw*Cin) patches, channels innermost."""
    kd, kh, kw = ksize
    pd, ph, pw = padding
    if pd or ph or pw:
        x = jnp.pad(x, ((0, 0), (pd, pd), (ph, ph), (pw, pw), (0, 0)))
    n, dp, hp, wp, cin = x.shape
    do, ho, wo = dp - kd + 1, hp - kh + 1, wp - kw + 1
    if (kd, kh, kw) == (1, 1, 1):
        a2d = x.reshape(-1, cin)              # no patch copy for 1x1x1 convs
    else:
        cols = []
        for a in range(kd):
            for bb in range(kh):
                for c in range(kw):
                    cols.append(x[:, a:a + do, bb:bb + ho, c:c + wo, :])
        a2d = jnp.concatenate(cols, axis=-1).reshape(-1, kd * kh * kw * cin)
    return a2d, (n, do, ho, wo), n * do * ho * wo


def conv_bn_relu(x, w, padding):
    """Conv3d(stride 1, no bias) -> BatchNorm3d(train-mode batch stats) -> ReLU."""
    kd, kh, kw, cin, cout = w.shape
    a2d, oshape, M = _im2col(x, (kd, kh, kw), padding)
    out_p, s, q = pallas_matmul_stats(a2d, w.reshape(kd * kh * kw * cin, cout))
    cnt = float(M)
    mean = s / cnt
    # NOTE: single-pass E[x^2]-E[x]^2 variance in f32 (BN train-mode semantics,
    # biased variance); use a mean-subtracted second pass if bit-accuracy to
    # PyTorch is required.
    var = jnp.maximum(q / cnt - mean * mean, 0.0)
    inv = jax.lax.rsqrt(var + EPS)
    y_p = pallas_scale_shift_relu(out_p, inv, -mean * inv)
    return y_p[:M].reshape(*oshape, cout)


def conv_block(x, weights, padding):
    """Sequence of [Conv3d -> BatchNorm3d -> ReLU], shared by encoder/decoder."""
    for w in weights:
        x = conv_bn_relu(x, w, padding)
    return x


def conv1x1_relu(x, w):
    """The 'expand' Conv3d(kernel=1, no bias) + ReLU created inside bilinear()."""
    cin, cout = w.shape[3], w.shape[4]
    n, d, h, wd, _ = x.shape
    out = pallas_matmul_bias_relu(x.reshape(-1, cin), w.reshape(cin, cout),
                                  jnp.zeros((cout,), jnp.float32))
    return out.reshape(n, d, h, wd, cout)


def bilinear(x, size, expand_w=None):
    """F.interpolate(mode='trilinear', align_corners=False) + optional expand."""
    n, d, h, w, c = x.shape
    if (d, h, w) != tuple(size):
        y = jax.image.resize(x.astype(jnp.float32),
                             (n, size[0], size[1], size[2], c),
                             method="trilinear", antialias=False)
        y = y.astype(jnp.bfloat16)
    else:
        y = x
    if expand_w is not None:
        y = conv1x1_relu(y, expand_w)
    return y


# ---------------------------------------------------------- parameter init ---
def _conv_w(key, ksize, cin, cout):
    kd, kh, kw = ksize
    fan_in = cin * kd * kh * kw
    return (jax.random.normal(key, (kd, kh, kw, cin, cout), jnp.float32)
            * (2.0 / fan_in) ** 0.5)


def init_params(key, in_channel=1, n_classes=15):
    state = {"key": key}

    def nk():
        state["key"], sub = jax.random.split(state["key"])
        return sub

    xy, zk = (1, 3, 3), (3, 1, 1)
    p = {}
    p["ec_init"] = [_conv_w(nk(), (1, 1, 1), in_channel, 32)]
    p["ec11"] = [_conv_w(nk(), xy, 32, 32) for _ in range(3)]
    p["ec22"] = [_conv_w(nk(), xy, 32, 32) for _ in range(3)]
    p["ec33"] = [_conv_w(nk(), xy, 32, 32) for _ in range(3)]
    p["ec441"] = [_conv_w(nk(), xy, 64, 64) for _ in range(3)]
    p["ec442"] = [_conv_w(nk(), zk, 64, 64)]
    p["ec551"] = [_conv_w(nk(), xy, 128, 128) for _ in range(3)]
    p["ec552"] = [_conv_w(nk(), zk, 128, 128)]
    p["ec661"] = [_conv_w(nk(), xy, 128, 128) for _ in range(3)]
    p["ec662"] = [_conv_w(nk(), zk, 128, 128)]
    p["ec771"] = [_conv_w(nk(), xy, 256, 256) for _ in range(3)]
    p["ec772"] = [_conv_w(nk(), zk, 256, 256)]
    # NOTE: nn.Linear applies x @ W.T; here we use x @ W with locally
    # initialized weights (transpose if ever loading real PyTorch weights).
    p["ec88"] = [(jax.random.normal(nk(), (256, 256), jnp.float32) * (1.0 / 256) ** 0.5,
                  jnp.zeros((256,), jnp.float32)) for _ in range(5)]

    def dec(in_c, out_c, n_convs):
        ws = []
        for n in range(n_convs):
            out = out_c if n == n_convs - 1 else in_c
            ws.append(_conv_w(nk(), xy, in_c, out))
        return ws

    p["dc77"] = dec(512, 256, 4)
    p["dc66"] = dec(256, 128, 4)
    p["dc55"] = dec(256, 128, 4)
    p["dc44"] = dec(128, 64, 4)
    p["dc33"] = dec(64, 32, 3)
    p["dc22"] = dec(64, 32, 3)
    p["dc11"] = dec(64, n_classes, 3)

    # "expand" 1x1x1 convs created inside bilinear() in the PyTorch forward
    # (random there at every call; deterministic parameters here).
    p["exp_e41"] = _conv_w(nk(), (1, 1, 1), 32, 64)
    p["exp_e51"] = _conv_w(nk(), (1, 1, 1), 64, 128)
    p["exp_e71"] = _conv_w(nk(), (1, 1, 1), 128, 256)
    p["exp_d61"] = _conv_w(nk(), (1, 1, 1), 256, 128)
    p["exp_d41"] = _conv_w(nk(), (1, 1, 1), 128, 64)
    p["exp_d31"] = _conv_w(nk(), (1, 1, 1), 64, 32)
    return p


# ----------------------------------------------------------------- forward ---
# The PyTorch module hard-codes skip sizes for a (D,H,W) = (9,112,128) input.
# We keep the identical D=9 pyramid but scale H,W by 1/4 so the test is SMALL
# and fast; pass the full-size tables to run at the original resolution.
SIZES = [(0, 0, 0), (9, 28, 32), (9, 28, 32), (9, 28, 32), (9, 14, 16),
         (7, 7, 8), (5, 4, 4), (3, 2, 2), (1, 1, 1)]
SIZES2 = [(0, 0, 0), (9, 28, 32), (9, 28, 32), (9, 28, 32), (7, 14, 16),
          (5, 7, 8), (3, 4, 4), (1, 2, 2), (1, 1, 1)]
XY_PAD = (0, 1, 1)
NO_PAD = (0, 0, 0)


def unet3d_forward(p, x_ncdhw, sizes=SIZES, sizes2=SIZES2):
    x = jnp.transpose(x_ncdhw, (0, 2, 3, 4, 1)).astype(jnp.bfloat16)  # -> NDHWC

    e1 = conv_block(x, p["ec_init"], NO_PAD)
    syn1 = conv_block(e1, p["ec11"], XY_PAD)
    e2 = bilinear(syn1, sizes[2])
    syn2 = conv_block(e2, p["ec22"], XY_PAD)
    e3 = bilinear(syn2, sizes[3])
    syn3 = conv_block(e3, p["ec33"], XY_PAD)
    e41 = bilinear(syn3, sizes[4], p["exp_e41"])
    e42 = conv_block(e41, p["ec441"], XY_PAD)
    syn4 = conv_block(e42, p["ec442"], NO_PAD)
    e51 = bilinear(syn4, sizes[5], p["exp_e51"])
    e52 = conv_block(e51, p["ec551"], XY_PAD)
    syn5 = conv_block(e52, p["ec552"], NO_PAD)
    e61 = bilinear(syn5, sizes[6])
    e62 = conv_block(e61, p["ec661"], XY_PAD)
    syn6 = conv_block(e62, p["ec662"], NO_PAD)
    e71 = bilinear(syn6, sizes[7], p["exp_e71"])
    e72 = conv_block(e71, p["ec771"], XY_PAD)
    syn7 = conv_block(e72, p["ec772"], NO_PAD)

    ebl = bilinear(syn7, sizes[8])                 # (B,1,1,1,256)
    batch = ebl.shape[0]
    ebr = ebl.reshape(batch, -1)                   # (B,256)
    for W, bvec in p["ec88"]:                      # 5 x (Linear + ReLU), fused
        ebr = pallas_matmul_bias_relu(ebr, W, bvec)
    ebr = ebr.reshape(batch, 1, 1, 1, -1)

    # TODO(synk): the channel concats could be removed by splitting the next
    # conv into two accumulating matmuls (one per source); kept as XLA glue.
    d71 = jnp.concatenate([bilinear(ebr, sizes2[7]), syn7], axis=-1)
    d72 = conv_block(d71, p["dc77"], XY_PAD)
    d61 = jnp.concatenate([bilinear(d72, sizes2[6], p["exp_d61"]), syn6], axis=-1)
    d62 = conv_block(d61, p["dc66"], XY_PAD)
    d51 = jnp.concatenate([bilinear(d62, sizes2[5]), syn5], axis=-1)
    d52 = conv_block(d51, p["dc55"], XY_PAD)
    d41 = jnp.concatenate([bilinear(d52, sizes2[4], p["exp_d41"]), syn4], axis=-1)
    d42 = conv_block(d41, p["dc44"], XY_PAD)
    d31 = jnp.concatenate([bilinear(d42, sizes2[3], p["exp_d31"]), syn3], axis=-1)
    d32 = conv_block(d31, p["dc33"], XY_PAD)
    d21 = jnp.concatenate([bilinear(d32, sizes2[2]), syn2], axis=-1)
    d22 = conv_block(d21, p["dc22"], XY_PAD)
    d11 = jnp.concatenate([bilinear(d22, sizes2[1]), syn1], axis=-1)
    d12 = conv_block(d11, p["dc11"], XY_PAD)

    return jnp.transpose(d12, (0, 4, 1, 2, 3)).astype(jnp.float32)  # -> NCDHW


# -------------------------------------------------------------------- main ---
if __name__ == "__main__":
    key = jax.random.PRNGKey(0)
    pkey, xkey = jax.random.split(key)
    params = init_params(pkey, in_channel=1, n_classes=15)
    # Small input consistent with the module's skip structure (D=9 pyramid,
    # H/W scaled down 4x from the hard-coded 112x128): NCDHW = (1,1,9,28,32).
    x = jax.random.normal(xkey, (1, 1, 9, 28, 32), jnp.float32)
    out = unet3d_forward(params, x)
    out = jax.block_until_ready(out)
    assert out.shape == (1, 15, 9, 28, 32), out.shape
    assert bool(jnp.all(jnp.isfinite(out)))
    print("KERNEL_OK")
</pallas_src>

<mosaic_0001>
module attributes {stable_mosaic.version = 11 : i64} {
  func.func @_mm_stats_kernel(%arg0: i32, %arg1: i32, %arg2: memref<1024x8xbf16, #tpu.memory_space<vmem>>, %arg3: memref<8x32xbf16, #tpu.memory_space<vmem>>, %arg4: memref<1024x32xbf16, #tpu.memory_space<vmem>>, %arg5: memref<1x8x32xf32, #tpu.memory_space<vmem>>, %arg6: memref<1x8x32xf32, #tpu.memory_space<vmem>>, %arg7: memref<1x32xf32, #tpu.memory_space<vmem>>, %arg8: memref<1x32xf32, #tpu.memory_space<vmem>>) attributes {dimension_semantics = [#tpu.dimension_semantics<parallel>, #tpu.dimension_semantics<arbitrary>], iteration_bounds = array<i64: 2, 4>, scalar_prefetch = 0 : i64, scratch_operands = 2 : i64, tpu.core_type = #tpu.core_type<tc>, window_params = [{transform_indices = @transform_0, window_bounds = array<i64: 1024, 8>}, {pipeline_mode = #tpu.pipeline_mode<synchronous>, transform_indices = @transform_1, window_bounds = array<i64: 8, 32>}, {transform_indices = @transform_2, window_bounds = array<i64: 1024, 32>}, {transform_indices = @transform_3, window_bounds = array<i64: 1, 8, 32>}, {transform_indices = @transform_4, window_bounds = array<i64: 1, 8, 32>}]} {
    %c0_i32 = arith.constant 0 : i32
    %0 = arith.cmpi eq, %arg1, %c0_i32 : i32
    %1 = arith.extui %0 : i1 to i32
    %c0_i32_0 = arith.constant 0 : i32
    %2 = arith.cmpi ne, %1, %c0_i32_0 : i32
    scf.if %2 {
      %cst_17 = arith.constant 0.000000e+00 : f32
      %22 = vector.broadcast %cst_17 : f32 to vector<1x32xf32>
      %c0_18 = arith.constant 0 : index
      %c0_19 = arith.constant 0 : index
      %23 = vector.load %arg7[%c0_18, %c0_19] : memref<1x32xf32, #tpu.memory_space<vmem>>, vector<1x32xf32>
      tpu.vector_store %arg7[%c0_18, %c0_19], %22 {strides = array<i32>} : memref<1x32xf32, #tpu.memory_space<vmem>>, vector<1x32xf32>,
      %cst_20 = arith.constant 0.000000e+00 : f32
      %24 = vector.broadcast %cst_20 : f32 to vector<1x32xf32>
      %c0_21 = arith.constant 0 : index
      %c0_22 = arith.constant 0 : index
      %25 = vector.load %arg8[%c0_21, %c0_22] : memref<1x32xf32, #tpu.memory_space<vmem>>, vector<1x32xf32>
      tpu.vector_store %arg8[%c0_21, %c0_22], %24 {strides = array<i32>} : memref<1x32xf32, #tpu.memory_space<vmem>>, vector<1x32xf32>,
    } else {
    }
    %c0 = arith.constant 0 : index
    %c0_1 = arith.constant 0 : index
    %3 = vector.load %arg2[%c0, %c0_1] : memref<1024x8xbf16, #tpu.memory_space<vmem>>, vector<1024x8xbf16>
    %c0_2 = arith.constant 0 : index
    %c0_3 = arith.constant 0 : index
    %4 = vector.load %arg3[%c0_2, %c0_3] : memref<8x32xbf16, #tpu.memory_space<vmem>>, vector<8x32xbf16>
    %cst = arith.constant dense<0.000000e+00> : vector<1024x32xf32>
    %5 = tpu.matmul %3, %4, %cst {dimension_numbers = #tpu.dot_dimension_numbers<[1], [0], [0], [1], [0, 0, 1, 1], [], []>} : vector<1024x8xbf16>, vector<8x32xbf16>, vector<1024x32xf32> -> vector<1024x32xf32>
    %6 = arith.truncf %5 : vector<1024x32xf32> to vector<1024x32xbf16>
    %c0_4 = arith.constant 0 : index
    %c0_5 = arith.constant 0 : index
    %7 = vector.load %arg4[%c0_4, %c0_5] : memref<1024x32xbf16, #tpu.memory_space<vmem>>, vector<1024x32xbf16>
    tpu.vector_store %arg4[%c0_4, %c0_5], %6 {strides = array<i32>} : memref<1024x32xbf16, #tpu.memory_space<vmem>>, vector<1024x32xbf16>,
    %c0_6 = arith.constant 0 : index
    %c0_7 = arith.constant 0 : index
    %8 = vector.load %arg7[%c0_6, %c0_7] : memref<1x32xf32, #tpu.memory_space<vmem>>, vector<1x32xf32>
    %cst_8 = arith.constant dense<0.000000e+00> : vector<32xf32>
    %9 = vector.multi_reduction <add>, %5, %cst_8 [0] : vector<1024x32xf32> to vector<32xf32>
    %10 = vector.shape_cast %9 : vector<32xf32> to vector<1x32xf32>
    %11 = arith.addf %8, %10 : vector<1x32xf32>
    %c0_9 = arith.constant 0 : index
    %c0_10 = arith.constant 0 : index
    %12 = vector.load %arg7[%c0_9, %c0_10] : memref<1x32xf32, #tpu.memory_space<vmem>>, vector<1x32xf32>
    tpu.vector_store %arg7[%c0_9, %c0_10], %11 {strides = array<i32>} : memref<1x32xf32, #tpu.memory_space<vmem>>, vector<1x32xf32>,
    %c0_11 = arith.constant 0 : index
    %c0_12 = arith.constant 0 : index
    %13 = vector.load %arg8[%c0_11, %c0_12] : memref<1x32xf32, #tpu.memory_space<vmem>>, vector<1x32xf32>
    %14 = arith.mulf %5, %5 : vector<1024x32xf32>
    %cst_13 = arith.constant dense<0.000000e+00> : vector<32xf32>
    %15 = vector.multi_reduction <add>, %14, %cst_13 [0] : vector<1024x32xf32> to vector<32xf32>
    %16 = vector.shape_cast %15 : vector<32xf32> to vector<1x32xf32>
    %17 = arith.addf %13, %16 : vector<1x32xf32>
    %c0_14 = arith.constant 0 : index
    %c0_15 = arith.constant 0 : index
    %18 = vector.load %arg8[%c0_14, %c0_15] : memref<1x32xf32, #tpu.memory_space<vmem>>, vector<1x32xf32>
    tpu.vector_store %arg8[%c0_14, %c0_15], %17 {strides = array<i32>} : memref<1x32xf32, #tpu.memory_space<vmem>>, vector<1x32xf32>,
    %c3_i32 = arith.constant 3 : i32
    %19 = arith.cmpi eq, %arg1, %c3_i32 : i32
    %20 = arith.extui %19 : i1 to i32
    %c0_i32_16 = arith.constant 0 : i32
    %21 = arith.cmpi ne, %20, %c0_i32_16 : i32
    scf.if %21 {
      %c0_17 = arith.constant 0 : index
      %c0_18 = arith.constant 0 : index
      %22 = vector.load %arg7[%c0_17, %c0_18] : memref<1x32xf32, #tpu.memory_space<vmem>>, vector<1x32xf32>
      %23 = vector.shape_cast %22 : vector<1x32xf32> to vector<1x1x32xf32>
      %24 = vector.broadcast %23 : vector<1x1x32xf32> to vector<1x8x32xf32>
      %c0_19 = arith.constant 0 : index
      %c0_20 = arith.constant 0 : index
      %c0_21 = arith.constant 0 : index
      %25 = vector.load %arg5[%c0_19, %c0_20, %c0_21] : memref<1x8x32xf32, #tpu.memory_space<vmem>>, vector<1x8x32xf32>
      tpu.vector_store %arg5[%c0_19, %c0_20, %c0_21], %24 {strides = array<i32>} : memref<1x8x32xf32, #tpu.memory_space<vmem>>, vector<1x8x32xf32>,
      %c0_22 = arith.constant 0 : index
      %c0_23 = arith.constant 0 : index
      %26 = vector.load %arg8[%c0_22, %c0_23] : memref<1x32xf32, #tpu.memory_space<vmem>>, vector<1x32xf32>
      %27 = vector.shape_cast %26 : vector<1x32xf32> to vector<1x1x32xf32>
      %28 = vector.broadcast %27 : vector<1x1x32xf32> to vector<1x8x32xf32>
      %c0_24 = arith.constant 0 : index
      %c0_25 = arith.constant 0 : index
      %c0_26 = arith.constant 0 : index
      %29 = vector.load %arg6[%c0_24, %c0_25, %c0_26] : memref<1x8x32xf32, #tpu.memory_space<vmem>>, vector<1x8x32xf32>
      tpu.vector_store %arg6[%c0_24, %c0_25, %c0_26], %28 {strides = array<i32>} : memref<1x8x32xf32, #tpu.memory_space<vmem>>, vector<1x8x32xf32>,
    } else {
    }
    return
  }
  func.func @transform_0(%arg0: i32, %arg1: i32) -> (i32, i32) {
    %c4_i32 = arith.constant 4 : i32
    %0 = arith.muli %arg0, %c4_i32 : i32
    %1 = arith.addi %0, %arg1 : i32
    %c0_i32 = arith.constant 0 : i32
    %c0_i32_0 = arith.constant 0 : i32
    return %1, %c0_i32 : i32, i32
  }
  func.func @transform_1(%arg0: i32, %arg1: i32) -> (i32, i32) {
    %c0_i32 = arith.constant 0 : i32
    %c0_i32_0 = arith.constant 0 : i32
    %c0_i32_1 = arith.constant 0 : i32
    return %c0_i32, %c0_i32_0 : i32, i32
  }
  func.func @transform_2(%arg0: i32, %arg1: i32) -> (i32, i32) {
    %c4_i32 = arith.constant 4 : i32
    %0 = arith.muli %arg0, %c4_i32 : i32
    %1 = arith.addi %0, %arg1 : i32
    %c0_i32 = arith.constant 0 : i32
    %c0_i32_0 = arith.constant 0 : i32
    return %1, %c0_i32 : i32, i32
  }
  func.func @transform_3(%arg0: i32, %arg1: i32) -> (i32, i32, i32) {
    %c0_i32 = arith.constant 0 : i32
    %c0_i32_0 = arith.constant 0 : i32
    %c0_i32_1 = arith.constant 0 : i32
    return %arg0, %c0_i32, %c0_i32_0 : i32, i32, i32
  }
  func.func @transform_4(%arg0: i32, %arg1: i32) -> (i32, i32, i32) {
    %c0_i32 = arith.constant 0 : i32
    %c0_i32_0 = arith.constant 0 : i32
    %c0_i32_1 = arith.constant 0 : i32
    return %arg0, %c0_i32, %c0_i32_0 : i32, i32, i32
  }
}

</mosaic_0001>

<bundles_post_ra>
// kernel: tpu_custom_call.1
= control target key start
LH: loop header
LB: loop body
LE: loop exit
PB: predicated region body
PF: predicated region fallthrough
CT: control target
= control target key end

     0   :  { %10 = vsyncpa [#allocation5], 0  ;;  %s5124_s0 = inlined_call_operand.vmem [shape: bf16[8192,8], index: 0, kind: input, shape index: {}]   ;;  %s5125_s1 = inlined_call_operand.vmem [shape: bf16[8,32], index: 1, kind: input, shape index: {}]   ;;  %s5126_s2 = inlined_call_operand.vmem [shape: bf16[8192,32], index: 2, kind: output, shape index: {0}]   ;;  %s5127_s3 = inlined_call_operand.hbm [shape: f32[2,8,32], index: 3, kind: output, shape index: {1}]   ;;  %s5128_s4 = inlined_call_operand.hbm [shape: f32[2,8,32], index: 4, kind: output, shape index: {2}]  }
   0x1   :  { %12 = vsyncpa [#allocation5 + $0x1], 0 }
   0x2   :  { %13 = vsyncpa [#allocation7], 0 }
   0x3   :  { %15 = vsyncpa [#allocation7 + $0x1], 0  ;;  %s3857_s15 = smov 0   ;;  %s3859_s16 = smov 0  }
   0x4   :  { %s3861_s17 = smov 0   ;;  %s3863_s18 = smov 0  }
   0x5   :  { %s3865_s19 = smov 0   ;;  %s3867_s20 = smov 0  }
   0x6   :  { %s3869_s21 = smov 0   ;;  %s3871_s22 = smov 0  }
   0x7 LB: > { %s2950_s23 = sadd.s32 4294967295, %s3827_s22   ;;  %s2951_s24 = sadd.s32 4294967294, %s3827_s22   ;;  %s3827_s22 = sphi %s3871_s22, %s21_s22   ;;  %s3823_s21 = sphi %s3869_s21, %s5156_s21   ;;  %s3819_s20 = sphi %s3867_s20, %s5155_s20   ;;  %s3815_s19 = sphi %s3865_s19, %s5154_s19   ;;  %s3811_s18 = sphi %s3863_s18, %s5153_s18   ;;  %s3807_s17 = sphi %s3861_s17, %s5152_s17   ;;  %s3803_s16 = sphi %s3859_s16, %s5151_s16   ;;  %s3799_s15 = sphi %s3857_s15, %s5150_s15  }
   0x8   : > { %s30_s25 = sadd.s32 1, %s3819_s20  ;;  %s33_s26 = sadd.s32 1, %s3823_s21 }
   0x9   : > { %p31_p0 = scmp.ge.s32.totalorder %s30_s25, 4  ;;  %p131_p1 = scmp.ne.s32.totalorder %s3807_s17, %s3803_s16 }
   0xa   : > { %p132_p2 = scmp.eq.s32.totalorder %s2950_s23, 7  ;;  %p137_p4 = scmp.ne.s32.totalorder %s3803_s16, %s3799_s15 }
   0xb   : > { %s5158_s25 = smov (%p31_p0, %s30_s25), 0  ;;  %s5160_s26 = smov (!%p31_p0, %s33_s26), %s3823_s21 }
   0xc   : > { %p3906_p3 = por %p132_p2, %p131_p1  ;;  %p35_p5 = scmp.ge.s32.totalorder %s5160_s26, 2 }
   0xd   : > { %p138_p6 = scmp.eq.s32.totalorder %s2951_s24, 7  ;;  %p2958_p7 = scmp.ge.s32.totalorder %s3827_s22, 1 }
   0xe   : > { %p198_p8 = scmp.lt.s32.totalorder %s3827_s22, 9  ;;  %s5162_s26 = smov (%p35_p5, %s5160_s26), 0 }
   0xf   : > { %5139 = sst [smem:[#allocation10_spill]] %s5162_s26  ;;  %p3916_p9 = por %p138_p6, %p137_p4 }
  0x10   : > { %p199_p10 = pnand %p2958_p7, %p198_p8  ;;  %s118_s29 = ssub.s32 %s3823_s21, %s5162_s26 }
  0x11   : > { %s121_s30 = sadd.s32 1, %s3807_s17  ;;  %p119_p11 = scmp.eq.s32.totalorder %s118_s29, 0 }
  0x12   : > { %202 = sbr.rel (%p199_p10) target bundleno = 586 (0x24a), region = 28 }
  0x13   : > { %s3924_s5 = scalar_select %p119_p11, %s3807_s17, %s121_s30  }
  0x19   : > { %s3927_s6 = sand.u32 1, %s3803_s16   ;;  %s2961_s7 = sshll.u32 %s3815_s19, 2 }
  0x1a   : > { %s2959_s8 = sshll.u32 %s3927_s6, 3  ;;  %s239_s9 = sadd.s32 %s3811_s18, %s2961_s7 }
  0x1b   : > { %s2962_s10 = sshll.u32 %s239_s9, 7  ;;  %s3942_s30 = scalar_lea.vmem [#allocation4], %s2959_s8 }
  0x1c   : > { %p241_p12 = scmp.lt.s32.totalorder %s2962_s10, 1023  ;;  %s3944_s26 = scalar_lea.vmem [#allocation6], %s2959_s8 }
  0x1d   : > { %p2967_p13 = scmp.ne.s32.totalorder %s3811_s18, 0 }
  0x1e   : > { %s5164_s10 = smov (!%p241_p12, %s2962_s10), 1023  ;;  %vm263_vm0 = vcmask (!%p2967_p13), 253952   ;;  %v3829_v0 = vmov (!%p2967_p13), 0.0  }
  0x1f   : > { %s2963_s11 = sshll.u32 %s5164_s10, 2  ;;  %262 = sbr.rel (%p2967_p13) target bundleno = 38 (0x26), region = 32  ;;  %264 = vst.msk [vmem:[#allocation2] sm:$0x1] (!%p2967_p13), %vm263_vm0, %v3829_v0  ;;  %265 = vst.msk [vmem:[#allocation3] sm:$0x1] (!%p2967_p13), %vm263_vm0, %v3829_v0 }
  0x20   : > { %s3935_s14 = scalar_lea.vmem %s5124_s0, %s2963_s11  ;;  %s3940_s29 = scalar_lea.vmem %s5126_s2, %s2963_s11 }
  0x26 PF: > { %v394_v1 = vld [vmem:[%s5125_s1] sm:$0xf]  ;;  %vm908_vm1 = vcmask 1043456   ;;  %vm715_vm2 = vcmask 64512   ;;  %v3638_v4 = vld [vmem:[%s3935_s14 + $0x8] sm:$0xff]   ;;  %v3639_v5 = vld [vmem:[%s3935_s14 + $0x10] sm:$0xff]  }
  0x27   : > { %v3637_v2 = vld [vmem:[%s3935_s14] sm:$0xff]   ;;  %3558 = vmatprep.subr.msk.bf16.mxu0 %vm908_vm1, %v394_v1  ;;  %v910_v3 = vsel %vm908_vm1, %v394_v1, 0  ;;  %3559 = vmatprep.subr.msk.bf16.mxu1 %vm908_vm1, %v394_v1  ;;  %v3640_v6 = vld [vmem:[%s3935_s14 + $0x18] sm:$0xff]   ;;  %v3642_v8 = vld [vmem:[%s3935_s14 + $0x28] sm:$0xff]   ;;  %vm1969_vm3 = vcmask 257024   ;;  %vm2099_vm4 = vcmask 261120  }
  0x28   : > { %3427 = vmatpush3.bf16.msra.mxu0 %v910_v3  ;;  %3428 = vmatprep.mubr.msk.bf16.mxu0 %vm715_vm2, %v3637_v2  ;;  %v3641_v7 = vld [vmem:[%s3935_s14 + $0x20] sm:$0xff]   ;;  %v3643_v9 = vld [vmem:[%s3935_s14 + $0x30] sm:$0xff]   ;;  %v3644_v10 = vld [vmem:[%s3935_s14 + $0x38] sm:$0xff]   ;;  %vm2362_vm5 = vcmask 253952   ;;  %p3224_p0 = scmp.ne.s32.totalorder %s3811_s18, 3 }
  0x29   : > { %3557 = vmatpush3.bf16.msra.mxu1 %v910_v3  ;;  %v3645_v11 = vld [vmem:[%s3935_s14 + $0x40] sm:$0xff]   ;;  %v3646_v12 = vld [vmem:[%s3935_s14 + $0x48] sm:$0xff]   ;;  %v3647_v13 = vld [vmem:[%s3935_s14 + $0x50] sm:$0xff]  }
  0x2a   : > { %v3669_v14 = vld [vmem:[%s3935_s14 + $0x100] sm:$0xff]   ;;  %v3670_v15 = vld [vmem:[%s3935_s14 + $0x108] sm:$0xff]   ;;  %v3671_v16 = vld [vmem:[%s3935_s14 + $0x110] sm:$0xff]  }
  0x2b   : > { %3429 = vmatmul.mubr.msk.bf16.vlgmr.msra.gmra.mrb[0].mxu0 %vm715_vm2, %v3638_v4  ;;  %3492 = vmatprep.mubr.msk.bf16.mxu1 %vm715_vm2, %v3669_v14  ;;  %v3648_v17 = vld [vmem:[%s3935_s14 + $0x58] sm:$0xff]   ;;  %v3673_v19 = vld [vmem:[%s3935_s14 + $0x120] sm:$0xff]   ;;  %v3650_v21 = vld [vmem:[%s3935_s14 + $0x68] sm:$0xff]  }
  0x2c   : > { %3432 = vmatprep.mubr.msk.bf16.mxu0 %vm715_vm2, %v3639_v5  ;;  %3493 = vmatmul.mubr.msk.bf16.vlgmr.msra.gmra.mrb[0].mxu1 %vm715_vm2, %v3670_v15  ;;  %v3672_v18 = vld [vmem:[%s3935_s14 + $0x118] sm:$0xff]   ;;  %v3649_v20 = vld [vmem:[%s3935_s14 + $0x60] sm:$0xff]   ;;  %v3674_v22 = vld [vmem:[%s3935_s14 + $0x128] sm:$0xff]  }
  0x2d   : > { %3496 = vmatprep.mubr.msk.bf16.mxu1 %vm715_vm2, %v3671_v16  ;;  %v3675_v23 = vld [vmem:[%s3935_s14 + $0x130] sm:$0xff]   ;;  %v3676_v25 = vld [vmem:[%s3935_s14 + $0x138] sm:$0xff]   ;;  %v3677_v27 = vld [vmem:[%s3935_s14 + $0x140] sm:$0xff]  }
  0x2e   : > { %v3651_v24 = vld [vmem:[%s3935_s14 + $0x70] sm:$0xff]   ;;  %v3652_v26 = vld [vmem:[%s3935_s14 + $0x78] sm:$0xff]   ;;  %v3653_v28 = vld [vmem:[%s3935_s14 + $0x80] sm:$0xff]  }
  0x2f   : > { %v3678_v29 = vld [vmem:[%s3935_s14 + $0x148] sm:$0xff]   ;;  %v3679_v31 = vld [vmem:[%s3935_s14 + $0x150] sm:$0xff]   ;;  %v3680_v33 = vld [vmem:[%s3935_s14 + $0x158] sm:$0xff]  }
  0x30   : > { %v3654_v30 = vld [vmem:[%s3935_s14 + $0x88] sm:$0xff]   ;;  %v3655_v32 = vld [vmem:[%s3935_s14 + $0x90] sm:$0xff]   ;;  %v3656_v34 = vld [vmem:[%s3935_s14 + $0x98] sm:$0xff]  }
  0x31   : > { %v3681_v35 = vld [vmem:[%s3935_s14 + $0x160] sm:$0xff]   ;;  %v3682_v37 = vld [vmem:[%s3935_s14 + $0x168] sm:$0xff]   ;;  %v3683_v39 = vld [vmem:[%s3935_s14 + $0x170] sm:$0xff]  }
  0x32   : > { %v3657_v36 = vld [vmem:[%s3935_s14 + $0xa0] sm:$0xff]   ;;  %v3658_v38 = vld [vmem:[%s3935_s14 + $0xa8] sm:$0xff]   ;;  %v3659_v40 = vld [vmem:[%s3935_s14 + $0xb0] sm:$0xff]  }
  0x33   : > { %3433 = vmatmul.mubr.msk.bf16.gmra.mrb[4].mxu0 %vm715_vm2, %v3640_v6  ;;  %v3684_v41 = vld [vmem:[%s3935_s14 + $0x178] sm:$0xff]   ;;  %v3685_v43 = vld [vmem:[%s3935_s14 + $0x180] sm:$0xff]   ;;  %v3686_v45 = vld [vmem:[%s3935_s14 + $0x188] sm:$0xff]  }
  0x34   : > { %3436 = vmatprep.mubr.msk.bf16.mxu0 %vm715_vm2, %v3641_v7  ;;  %3497 = vmatmul.mubr.msk.bf16.gmra.mrb[4].mxu1 %vm715_vm2, %v3672_v18  ;;  %v3660_v42 = vld [vmem:[%s3935_s14 + $0xb8] sm:$0xff]   ;;  %v3661_v44 = vld [vmem:[%s3935_s14 + $0xc0] sm:$0xff]   ;;  %v3662_v46 = vld [vmem:[%s3935_s14 + $0xc8] sm:$0xff]  }
  0x35   : > { %3500 = vmatprep.mubr.msk.bf16.mxu1 %vm715_vm2, %v3673_v19  ;;  %v3687_v47 = vld [vmem:[%s3935_s14 + $0x190] sm:$0xff]   ;;  %v3688_v49 = vld [vmem:[%s3935_s14 + $0x198] sm:$0xff]   ;;  %v3689_v51 = vld [vmem:[%s3935_s14 + $0x1a0] sm:$0xff]  }
  0x36   : > { %v3663_v48 = vld [vmem:[%s3935_s14 + $0xd0] sm:$0xff]   ;;  %v3664_v50 = vld [vmem:[%s3935_s14 + $0xd8] sm:$0xff]   ;;  %v3665_v52 = vld [vmem:[%s3935_s14 + $0xe0] sm:$0xff]  }
  0x37   : > { %v3690_v53 = vld [vmem:[%s3935_s14 + $0x1a8] sm:$0xff]   ;;  %v3691_v55 = vld [vmem:[%s3935_s14 + $0x1b0] sm:$0xff]   ;;  %v3692_v57 = vld [vmem:[%s3935_s14 + $0x1b8] sm:$0xff]  }
  0x38   : > { %v3666_v54 = vld [vmem:[%s3935_s14 + $0xe8] sm:$0xff]   ;;  %v3667_v56 = vld [vmem:[%s3935_s14 + $0xf0] sm:$0xff]   ;;  %v3668_v58 = vld [vmem:[%s3935_s14 + $0xf8] sm:$0xff]  }
  0x39   : > { %v3693_v59 = vld [vmem:[%s3935_s14 + $0x1c0] sm:$0xff]   ;;  %v3694_v60 = vld [vmem:[%s3935_s14 + $0x1c8] sm:$0xff]   ;;  %v3695_v61 = vld [vmem:[%s3935_s14 + $0x1d0] sm:$0xff]  }
  0x3a   : > { %v3696_v62 = vld [vmem:[%s3935_s14 + $0x1d8] sm:$0xff]   ;;  %v3697_v63 = vld [vmem:[%s3935_s14 + $0x1e0] sm:$0xff]   ;;  %v3698_v0 = vld [vmem:[%s3935_s14 + $0x1e8] sm:$0xff]  }
  0x3b   : > { %3437 = vmatmul.mubr.msk.bf16.gmra.mrb[8].mxu0 %vm715_vm2, %v3642_v8  ;;  %v3699_v1 = vld [vmem:[%s3935_s14 + $0x1f0] sm:$0xff]   ;;  %v3700_v2 = vld [vmem:[%s3935_s14 + $0x1f8] sm:$0xff]  }
  0x3c   : > { %3440 = vmatprep.mubr.msk.bf16.mxu0 %vm715_vm2, %v3643_v9  ;;  %3501 = vmatmul.mubr.msk.bf16.gmra.mrb[8].mxu1 %vm715_vm2, %v3674_v22 }
  0x3d   : > { %3504 = vmatprep.mubr.msk.bf16.mxu1 %vm715_vm2, %v3675_v23 }
  0x43   : > { %3441 = vmatmul.mubr.msk.bf16.gmra.mrb[12].mxu0 %vm715_vm2, %v3644_v10 }
  0x44   : > { %3444 = vmatprep.mubr.msk.bf16.mxu0 %vm715_vm2, %v3645_v11  ;;  %3505 = vmatmul.mubr.msk.bf16.gmra.mrb[12].mxu1 %vm715_vm2, %v3676_v25 }
  0x45   : > { %3508 = vmatprep.mubr.msk.bf16.mxu1 %vm715_vm2, %v3677_v27 }
  0x4b   : > { %3445 = vmatmul.mubr.msk.bf16.gmra.mrb[16].mxu0 %vm715_vm2, %v3646_v12 }
  0x4c   : > { %3448 = vmatprep.mubr.msk.bf16.mxu0 %vm715_vm2, %v3647_v13  ;;  %3509 = vmatmul.mubr.msk.bf16.gmra.mrb[16].mxu1 %vm715_vm2, %v3678_v29 }
  0x4d   : > { %3512 = vmatprep.mubr.msk.bf16.mxu1 %vm715_vm2, %v3679_v31 }
  0x53   : > { %3449 = vmatmul.mubr.msk.bf16.gmra.mrb[20].mxu0 %vm715_vm2, %v3648_v17 }
  0x54   : > { %3452 = vmatprep.mubr.msk.bf16.mxu0 %vm715_vm2, %v3649_v20  ;;  %3513 = vmatmul.mubr.msk.bf16.gmra.mrb[20].mxu1 %vm715_vm2, %v3680_v33 }
  0x55   : > { %3516 = vmatprep.mubr.msk.bf16.mxu1 %vm715_vm2, %v3681_v35 }
  0x5b   : > { %3453 = vmatmul.mubr.msk.bf16.gmra.mrb[24].mxu0 %vm715_vm2, %v3650_v21 }
  0x5c   : > { %3456 = vmatprep.mubr.msk.bf16.mxu0 %vm715_vm2, %v3651_v24  ;;  %3517 = vmatmul.mubr.msk.bf16.gmra.mrb[24].mxu1 %vm715_vm2, %v3682_v37 }
  0x5d   : > { %3520 = vmatprep.mubr.msk.bf16.mxu1 %vm715_vm2, %v3683_v39 }
  0x63   : > { %3457 = vmatmul.mubr.msk.bf16.gmra.mrb[28].mxu0 %vm715_vm2, %v3652_v26 }
  0x64   : > { %3460 = vmatprep.mubr.msk.bf16.mxu0 %vm715_vm2, %v3653_v28  ;;  %3521 = vmatmul.mubr.msk.bf16.gmra.mrb[28].mxu1 %vm715_vm2, %v3684_v41 }
  0x65   : > { %3524 = vmatprep.mubr.msk.bf16.mxu1 %vm715_vm2, %v3685_v43 }
  0x6b   : > { %3461 = vmatmul.mubr.msk.bf16.gmra.mrb[32].mxu0 %vm715_vm2, %v3654_v30 }
  0x6c   : > { %3464 = vmatprep.mubr.msk.bf16.mxu0 %vm715_vm2, %v3655_v32  ;;  %3525 = vmatmul.mubr.msk.bf16.gmra.mrb[32].mxu1 %vm715_vm2, %v3686_v45 }
  0x6d   : > { %3528 = vmatprep.mubr.msk.bf16.mxu1 %vm715_vm2, %v3687_v47 }
  0x73   : > { %3465 = vmatmul.mubr.msk.bf16.gmra.mrb[36].mxu0 %vm715_vm2, %v3656_v34 }
  0x74   : > { %3468 = vmatprep.mubr.msk.bf16.mxu0 %vm715_vm2, %v3657_v36  ;;  %3529 = vmatmul.mubr.msk.bf16.gmra.mrb[36].mxu1 %vm715_vm2, %v3688_v49 }
  0x75   : > { %3532 = vmatprep.mubr.msk.bf16.mxu1 %vm715_vm2, %v3689_v51 }
  0x7b   : > { %3469 = vmatmul.mubr.msk.bf16.gmra.mrb[40].mxu0 %vm715_vm2, %v3658_v38 }
  0x7c   : > { %3472 = vmatprep.mubr.msk.bf16.mxu0 %vm715_vm2, %v3659_v40  ;;  %3533 = vmatmul.mubr.msk.bf16.gmra.mrb[40].mxu1 %vm715_vm2, %v3690_v53 }
  0x7d   : > { %3536 = vmatprep.mubr.msk.bf16.mxu1 %vm715_vm2, %v3691_v55 }
  0x83   : > { %3473 = vmatmul.mubr.msk.bf16.gmra.mrb[44].mxu0 %vm715_vm2, %v3660_v42 }
  0x84   : > { %3476 = vmatprep.mubr.msk.bf16.mxu0 %vm715_vm2, %v3661_v44  ;;  %3537 = vmatmul.mubr.msk.bf16.gmra.mrb[44].mxu1 %vm715_vm2, %v3692_v57 }
  0x85   : > { %3540 = vmatprep.mubr.msk.bf16.mxu1 %vm715_vm2, %v3693_v59 }
  0x8b   : > { %3477 = vmatmul.mubr.msk.bf16.gmra.mrb[48].mxu0 %vm715_vm2, %v3662_v46 }
  0x8c   : > { %3480 = vmatprep.mubr.msk.bf16.mxu0 %vm715_vm2, %v3663_v48  ;;  %3541 = vmatmul.mubr.msk.bf16.gmra.mrb[48].mxu1 %vm715_vm2, %v3694_v60 }
  0x8d   : > { %3544 = vmatprep.mubr.msk.bf16.mxu1 %vm715_vm2, %v3695_v61 }
  0x93   : > { %3481 = vmatmul.mubr.msk.bf16.gmra.mrb[52].mxu0 %vm715_vm2, %v3664_v50 }
  0x94   : > { %3484 = vmatprep.mubr.msk.bf16.mxu0 %vm715_vm2, %v3665_v52  ;;  %3545 = vmatmul.mubr.msk.bf16.gmra.mrb[52].mxu1 %vm715_vm2, %v3696_v62 }
  0x95   : > { %3548 = vmatprep.mubr.msk.bf16.mxu1 %vm715_vm2, %v3697_v63 }
  0x9b   : > { %3485 = vmatmul.mubr.msk.bf16.gmra.mrb[56].mxu0 %vm715_vm2, %v3666_v54 }
  0x9c   : > { %3488 = vmatprep.mubr.msk.bf16.mxu0 %vm715_vm2, %v3667_v56  ;;  %3549 = vmatmul.mubr.msk.bf16.gmra.mrb[56].mxu1 %vm715_vm2, %v3698_v0 }
  0x9d   : > { %3552 = vmatprep.mubr.msk.bf16.mxu1 %vm715_vm2, %v3699_v1 }
  0xa3   : > { %3489 = vmatmul.mubr.msk.bf16.gmra.mrb[60].mxu0 %vm715_vm2, %v3668_v58 }
  0xa4   : > { %3553 = vmatmul.mubr.msk.bf16.gmra.mrb[60].mxu1 %vm715_vm2, %v3700_v2 }
  0xfe   : > { %v3430_v3 = vpop.f32.mrb[0].mxu0 }
  0xff   : > { %v3235_v4 = vpack.c.bf16 %v3430_v3, %v3430_v3  ;;  %v946_v5 = vpop.f32.mrb[1].mxu0  ;;  %v2367_v9 = vmul.f32 %v3430_v3, %v3430_v3  ;;  %v2103_v18 = vsel %vm2099_vm4, %v3430_v3, 0.0 }
 0x100   : > { %v3233_v6 = vpack.c.bf16 %v946_v5, %v946_v5  ;;  %v2365_v7 = vmul.f32 %v946_v5, %v946_v5  ;;  %v3431_v8 = vpop.f32.mrb[2].mxu0  ;;  %v2100_v12 = vsel %vm2099_vm4, %v946_v5, 0.0 }
 0x101   : > { %1972 = vst.msk [vmem:[%s3940_s29 + $0x8] sm:$0xf] %vm1969_vm3, %v3235_v4  ;;  %v3236_v10 = vpack.c.bf16 %v3431_v8, %v3431_v8  ;;  %v949_v11 = vpop.f32.mrb[3].mxu0  ;;  %v2368_v16 = vmul.f32 %v3431_v8, %v3431_v8  ;;  %v2496_v23 = vsel %vm2099_vm4, %v2367_v9, 0.0  ;;  %v2105_v25 = vsel %vm2099_vm4, %v3431_v8, 0.0 }
 0x102   : > { %1970 = vst.msk [vmem:[%s3940_s29] sm:$0xf] %vm1969_vm3, %v3233_v6  ;;  %v3234_v13 = vpack.c.bf16 %v949_v11, %v949_v11  ;;  %v2101_v14 = vsel %vm2099_vm4, %v949_v11, 0.0  ;;  %v2366_v15 = vmul.f32 %v949_v11, %v949_v11  ;;  %v2493_v19 = vsel %vm2099_vm4, %v2365_v7, 0.0 }
 0x103   : > { %1973 = vst.msk [vmem:[%s3940_s29 + $0xc] sm:$0xf] %vm1969_vm3, %v3236_v10  ;;  %v2102_v17 = vadd.f32 %v2101_v14, %v2100_v12  ;;  %v2498_v26 = vsel %vm2099_vm4, %v2368_v16, 0.0 }
 0x104   : > { %1971 = vst.msk [vmem:[%s3940_s29 + $0x4] sm:$0xf] %vm1969_vm3, %v3234_v13  ;;  %v2494_v20 = vsel %vm2099_vm4, %v2366_v15, 0.0 }
 0x105   : > { %v2104_v21 = vadd.f32 %v2103_v18, %v2102_v17  ;;  %v2495_v22 = vadd.f32 %v2494_v20, %v2493_v19 }
 0x106   : > { %v3434_v24 = vpop.f32.mrb[4].mxu0 }
 0x107   : > { %v2497_v27 = vadd.f32 %v2496_v23, %v2495_v22  ;;  %v3239_v28 = vpack.c.bf16 %v3434_v24, %v3434_v24  ;;  %v962_v29 = vpop.f32.mrb[5].mxu0  ;;  %v2106_v31 = vadd.f32 %v2105_v25, %v2104_v21  ;;  %v2371_v41 = vmul.f32 %v3434_v24, %v3434_v24 }
 0x108   : > { %v3237_v30 = vpack.c.bf16 %v962_v29, %v962_v29  ;;  %v2107_v32 = vsel %vm2099_vm4, %v962_v29, 0.0  ;;  %v2369_v33 = vmul.f32 %v962_v29, %v962_v29  ;;  %v3435_v34 = vpop.f32.mrb[6].mxu0  ;;  %v2111_v46 = vsel %vm2099_vm4, %v3434_v24, 0.0 }
 0x109   : > { %1976 = vst.msk [vmem:[%s3940_s29 + $0x18] sm:$0xf] %vm1969_vm3, %v3239_v28  ;;  %v2499_v35 = vadd.f32 %v2498_v26, %v2497_v27  ;;  %v3240_v36 = vpack.c.bf16 %v3435_v34, %v3435_v34  ;;  %v965_v37 = vpop.f32.mrb[7].mxu0  ;;  %v2108_v38 = vadd.f32 %v2107_v32, %v2106_v31  ;;  %v2372_v47 = vmul.f32 %v3435_v34, %v3435_v34 }
 0x10a   : > { %1974 = vst.msk [vmem:[%s3940_s29 + $0x10] sm:$0xf] %vm1969_vm3, %v3237_v30  ;;  %v2500_v39 = vsel %vm2099_vm4, %v2369_v33, 0.0  ;;  %v3238_v40 = vpack.c.bf16 %v965_v37, %v965_v37  ;;  %v2109_v43 = vsel %vm2099_vm4, %v965_v37, 0.0  ;;  %v2370_v44 = vmul.f32 %v965_v37, %v965_v37 }
 0x10b   : > { %v2501_v42 = vadd.f32 %v2500_v39, %v2499_v35  ;;  %1977 = vst.msk [vmem:[%s3940_s29 + $0x1c] sm:$0xf] %vm1969_vm3, %v3240_v36  ;;  %v2110_v45 = vadd.f32 %v2109_v43, %v2108_v38  ;;  %v2504_v52 = vsel %vm2099_vm4, %v2371_v41, 0.0  ;;  %v2113_v53 = vsel %vm2099_vm4, %v3435_v34, 0.0  ;;  %v4139_v41 = vpop.f32.mrb[0].mxu1 }
 0x10c   : > { %1975 = vst.msk [vmem:[%s3940_s29 + $0x14] sm:$0xf] %vm1969_vm3, %v3238_v40  ;;  %v2502_v48 = vsel %vm2099_vm4, %v2370_v44, 0.0  ;;  %v2506_v61 = vsel %vm2099_vm4, %v2372_v47, 0.0 }
 0x10d   : > { %v2112_v49 = vadd.f32 %v2111_v46, %v2110_v45  ;;  %v2503_v50 = vadd.f32 %v2502_v48, %v2501_v42  ;;  %v3299_v45 = vpack.c.bf16 %v4139_v41, %v4139_v41  ;;  %v4143_v46 = vpop.f32.mrb[1].mxu1 }
 0x10e   : > { %v3438_v51 = vpop.f32.mrb[8].mxu0 }
 0x10f   : > { %v3243_v54 = vpack.c.bf16 %v3438_v51, %v3438_v51  ;;  %v978_v55 = vpop.f32.mrb[9].mxu0  ;;  %v2505_v56 = vadd.f32 %v2504_v52, %v2503_v50  ;;  %v2114_v58 = vadd.f32 %v2113_v53, %v2112_v49  ;;  %v2375_v4 = vmul.f32 %v3438_v51, %v3438_v51  ;;  %2036 = vst.msk [vmem:[%s3940_s29 + $0x108] sm:$0xf] %vm1969_vm3, %v3299_v45 }
 0x110   : > { %v3241_v57 = vpack.c.bf16 %v978_v55, %v978_v55  ;;  %v2115_v59 = vsel %vm2099_vm4, %v978_v55, 0.0  ;;  %v3439_v60 = vpop.f32.mrb[10].mxu0  ;;  %v2373_v62 = vmul.f32 %v978_v55, %v978_v55  ;;  %v2119_v10 = vsel %vm2099_vm4, %v3438_v51, 0.0  ;;  %v4147_v51 = vpop.f32.mrb[2].mxu1 }
 0x111   : > { %1980 = vst.msk [vmem:[%s3940_s29 + $0x28] sm:$0xf] %vm1969_vm3, %v3243_v54  ;;  %v3244_v63 = vpack.c.bf16 %v3439_v60, %v3439_v60  ;;  %v981_v0 = vpop.f32.mrb[11].mxu0  ;;  %v2116_v1 = vadd.f32 %v2115_v59, %v2114_v58  ;;  %v2507_v2 = vadd.f32 %v2506_v61, %v2505_v56  ;;  %v2376_v11 = vmul.f32 %v3439_v60, %v3439_v60 }
 0x112   : > { %1978 = vst.msk [vmem:[%s3940_s29 + $0x20] sm:$0xf] %vm1969_vm3, %v3241_v57  ;;  %v3242_v3 = vpack.c.bf16 %v981_v0, %v981_v0  ;;  %v2508_v5 = vsel %vm2099_vm4, %v2373_v62, 0.0  ;;  %v2117_v6 = vsel %vm2099_vm4, %v981_v0, 0.0  ;;  %v2374_v7 = vmul.f32 %v981_v0, %v981_v0  ;;  %v4152_v57 = vpop.f32.mrb[3].mxu1 }
 0x113   : > { %1981 = vst.msk [vmem:[%s3940_s29 + $0x2c] sm:$0xf] %vm1969_vm3, %v3244_v63  ;;  %v2509_v8 = vadd.f32 %v2508_v5, %v2507_v2  ;;  %v2118_v9 = vadd.f32 %v2117_v6, %v2116_v1  ;;  %v2512_v16 = vsel %vm2099_vm4, %v2375_v4, 0.0  ;;  %v2121_v17 = vsel %vm2099_vm4, %v3439_v60, 0.0 }
 0x114   : > { %1979 = vst.msk [vmem:[%s3940_s29 + $0x24] sm:$0xf] %vm1969_vm3, %v3242_v3  ;;  %v2510_v12 = vsel %vm2099_vm4, %v2374_v7, 0.0  ;;  %v2514_v25 = vsel %vm2099_vm4, %v2376_v11, 0.0  ;;  %v3297_v7 = vpack.c.bf16 %v4143_v46, %v4143_v46  ;;  %v3300_v11 = vpack.c.bf16 %v4147_v51, %v4147_v51 }
 0x115   : > { %v2120_v13 = vadd.f32 %v2119_v10, %v2118_v9  ;;  %v2511_v14 = vadd.f32 %v2510_v12, %v2509_v8  ;;  %v4171_v12 = vpop.f32.mrb[4].mxu1 }
 0x116   : > { %v3442_v15 = vpop.f32.mrb[12].mxu0  ;;  %2034 = vst.msk [vmem:[%s3940_s29 + $0x100] sm:$0xf] %vm1969_vm3, %v3297_v7  ;;  %2037 = vst.msk [vmem:[%s3940_s29 + $0x10c] sm:$0xf] %vm1969_vm3, %v3300_v11 }
 0x117   : > { %v3247_v18 = vpack.c.bf16 %v3442_v15, %v3442_v15  ;;  %v994_v19 = vpop.f32.mrb[13].mxu0  ;;  %v2513_v20 = vadd.f32 %v2512_v16, %v2511_v14  ;;  %v2122_v22 = vadd.f32 %v2121_v17, %v2120_v13  ;;  %v2379_v32 = vmul.f32 %v3442_v15, %v3442_v15  ;;  %v4175_v16 = vpop.f32.mrb[5].mxu1 }
 0x118   : > { %v3245_v21 = vpack.c.bf16 %v994_v19, %v994_v19  ;;  %v2123_v23 = vsel %vm2099_vm4, %v994_v19, 0.0  ;;  %v3443_v24 = vpop.f32.mrb[14].mxu0  ;;  %v2377_v26 = vmul.f32 %v994_v19, %v994_v19  ;;  %v2127_v38 = vsel %vm2099_vm4, %v3442_v15, 0.0 }
 0x119   : > { %1984 = vst.msk [vmem:[%s3940_s29 + $0x38] sm:$0xf] %vm1969_vm3, %v3247_v18  ;;  %v3248_v27 = vpack.c.bf16 %v3443_v24, %v3443_v24  ;;  %v997_v28 = vpop.f32.mrb[15].mxu0  ;;  %v2124_v29 = vadd.f32 %v2123_v23, %v2122_v22  ;;  %v2515_v30 = vadd.f32 %v2514_v25, %v2513_v20  ;;  %v2380_v39 = vmul.f32 %v3443_v24, %v3443_v24 }
 0x11a   : > { %1982 = vst.msk [vmem:[%s3940_s29 + $0x30] sm:$0xf] %vm1969_vm3, %v3245_v21  ;;  %v3246_v31 = vpack.c.bf16 %v997_v28, %v997_v28  ;;  %v2516_v33 = vsel %vm2099_vm4, %v2377_v26, 0.0  ;;  %v2125_v34 = vsel %vm2099_vm4, %v997_v28, 0.0  ;;  %v2378_v35 = vmul.f32 %v997_v28, %v997_v28  ;;  %v4181_v21 = vpop.f32.mrb[6].mxu1 }
 0x11b   : > { %1985 = vst.msk [vmem:[%s3940_s29 + $0x3c] sm:$0xf] %vm1969_vm3, %v3248_v27  ;;  %v2517_v36 = vadd.f32 %v2516_v33, %v2515_v30  ;;  %v2126_v37 = vadd.f32 %v2125_v34, %v2124_v29  ;;  %v2520_v47 = vsel %vm2099_vm4, %v2379_v32, 0.0  ;;  %v2129_v48 = vsel %vm2099_vm4, %v3443_v24, 0.0  ;;  %v4184_v27 = vpop.f32.mrb[7].mxu1 }
 0x11c   : > { %1983 = vst.msk [vmem:[%s3940_s29 + $0x34] sm:$0xf] %vm1969_vm3, %v3246_v31  ;;  %v2518_v40 = vsel %vm2099_vm4, %v2378_v35, 0.0  ;;  %v2522_v58 = vsel %vm2099_vm4, %v2380_v39, 0.0 }
 0x11d   : > { %v2128_v42 = vadd.f32 %v2127_v38, %v2126_v37  ;;  %v2519_v43 = vadd.f32 %v2518_v40, %v2517_v36 }
 0x11e   : > { %v3446_v44 = vpop.f32.mrb[16].mxu0 }
 0x11f   : > { %v3251_v49 = vpack.c.bf16 %v3446_v44, %v3446_v44  ;;  %v1010_v50 = vpop.f32.mrb[17].mxu0  ;;  %v2521_v52 = vadd.f32 %v2520_v47, %v2519_v43  ;;  %v2130_v54 = vadd.f32 %v2129_v48, %v2128_v42  ;;  %v2383_v1 = vmul.f32 %v3446_v44, %v3446_v44  ;;  %v4203_v48 = vpop.f32.mrb[8].mxu1 }
 0x120   : > { %v3249_v53 = vpack.c.bf16 %v1010_v50, %v1010_v50  ;;  %v2131_v55 = vsel %vm2099_vm4, %v1010_v50, 0.0  ;;  %v3447_v56 = vpop.f32.mrb[18].mxu0  ;;  %v2381_v59 = vmul.f32 %v1010_v50, %v1010_v50  ;;  %v2135_v8 = vsel %vm2099_vm4, %v3446_v44, 0.0 }
 0x121   : > { %1988 = vst.msk [vmem:[%s3940_s29 + $0x48] sm:$0xf] %vm1969_vm3, %v3251_v49  ;;  %v3252_v60 = vpack.c.bf16 %v3447_v56, %v3447_v56  ;;  %v1013_v61 = vpop.f32.mrb[19].mxu0  ;;  %v2132_v62 = vadd.f32 %v2131_v55, %v2130_v54  ;;  %v2523_v63 = vadd.f32 %v2522_v58, %v2521_v52  ;;  %v2384_v9 = vmul.f32 %v3447_v56, %v3447_v56 }
 0x122   : > { %1986 = vst.msk [vmem:[%s3940_s29 + $0x40] sm:$0xf] %vm1969_vm3, %v3249_v53  ;;  %v3250_v0 = vpack.c.bf16 %v1013_v61, %v1013_v61  ;;  %v2524_v2 = vsel %vm2099_vm4, %v2381_v59, 0.0  ;;  %v2133_v3 = vsel %vm2099_vm4, %v1013_v61, 0.0  ;;  %v2382_v4 = vmul.f32 %v1013_v61, %v1013_v61  ;;  %v4207_v53 = vpop.f32.mrb[9].mxu1 }
 0x123   : > { %1989 = vst.msk [vmem:[%s3940_s29 + $0x4c] sm:$0xf] %vm1969_vm3, %v3252_v60  ;;  %v2525_v5 = vadd.f32 %v2524_v2, %v2523_v63  ;;  %v2134_v6 = vadd.f32 %v2133_v3, %v2132_v62  ;;  %v2528_v17 = vsel %vm2099_vm4, %v2383_v1, 0.0  ;;  %v2137_v18 = vsel %vm2099_vm4, %v3447_v56, 0.0  ;;  %v4213_v59 = vpop.f32.mrb[10].mxu1 }
 0x124   : > { %1987 = vst.msk [vmem:[%s3940_s29 + $0x44] sm:$0xf] %vm1969_vm3, %v3250_v0  ;;  %v2526_v10 = vsel %vm2099_vm4, %v2382_v4, 0.0  ;;  %v2530_v28 = vsel %vm2099_vm4, %v2384_v9, 0.0  ;;  %v3298_v42 = vpack.c.bf16 %v4152_v57, %v4152_v57  ;;  %v3303_v47 = vpack.c.bf16 %v4171_v12, %v4171_v12  ;;  %v4216_v1 = vpop.f32.mrb[11].mxu1 }
 0x125   : > { %v2136_v13 = vadd.f32 %v2135_v8, %v2134_v6  ;;  %v2527_v14 = vadd.f32 %v2526_v10, %v2525_v5 }
 0x126   : > { %v3450_v15 = vpop.f32.mrb[20].mxu0  ;;  %2035 = vst.msk [vmem:[%s3940_s29 + $0x104] sm:$0xf] %vm1969_vm3, %v3298_v42  ;;  %2040 = vst.msk [vmem:[%s3940_s29 + $0x118] sm:$0xf] %vm1969_vm3, %v3303_v47 }
 0x127   : > { %v3255_v19 = vpack.c.bf16 %v3450_v15, %v3450_v15  ;;  %v1026_v20 = vpop.f32.mrb[21].mxu0  ;;  %v2529_v22 = vadd.f32 %v2528_v17, %v2527_v14  ;;  %v2138_v24 = vadd.f32 %v2137_v18, %v2136_v13  ;;  %v2387_v35 = vmul.f32 %v3450_v15, %v3450_v15 }
 0x128   : > { %v3253_v23 = vpack.c.bf16 %v1026_v20, %v1026_v20  ;;  %v2139_v25 = vsel %vm2099_vm4, %v1026_v20, 0.0  ;;  %v3451_v26 = vpop.f32.mrb[22].mxu0  ;;  %v2385_v29 = vmul.f32 %v1026_v20, %v1026_v20  ;;  %v2143_v43 = vsel %vm2099_vm4, %v3450_v15, 0.0 }
 0x129   : > { %1992 = vst.msk [vmem:[%s3940_s29 + $0x58] sm:$0xf] %vm1969_vm3, %v3255_v19  ;;  %v3256_v30 = vpack.c.bf16 %v3451_v26, %v3451_v26  ;;  %v1029_v31 = vpop.f32.mrb[23].mxu0  ;;  %v2140_v32 = vadd.f32 %v2139_v25, %v2138_v24  ;;  %v2531_v33 = vadd.f32 %v2530_v28, %v2529_v22  ;;  %v2388_v44 = vmul.f32 %v3451_v26, %v3451_v26 }
 0x12a   : > { %1990 = vst.msk [vmem:[%s3940_s29 + $0x50] sm:$0xf] %vm1969_vm3, %v3253_v23  ;;  %v3254_v34 = vpack.c.bf16 %v1029_v31, %v1029_v31  ;;  %v2532_v36 = vsel %vm2099_vm4, %v2385_v29, 0.0  ;;  %v2141_v37 = vsel %vm2099_vm4, %v1029_v31, 0.0  ;;  %v2386_v38 = vmul.f32 %v1029_v31, %v1029_v31  ;;  %v4235_v23 = vpop.f32.mrb[12].mxu1 }
 0x12b   : > { %1993 = vst.msk [vmem:[%s3940_s29 + $0x5c] sm:$0xf] %vm1969_vm3, %v3256_v30  ;;  %v2533_v39 = vadd.f32 %v2532_v36, %v2531_v33  ;;  %v2142_v40 = vadd.f32 %v2141_v37, %v2140_v32  ;;  %v2536_v54 = vsel %vm2099_vm4, %v2387_v35, 0.0  ;;  %v2145_v55 = vsel %vm2099_vm4, %v3451_v26, 0.0  ;;  %v4239_v28 = vpop.f32.mrb[13].mxu1 }
 0x12c   : > { %1991 = vst.msk [vmem:[%s3940_s29 + $0x54] sm:$0xf] %vm1969_vm3, %v3254_v34  ;;  %v2534_v45 = vsel %vm2099_vm4, %v2386_v38, 0.0  ;;  %v2538_v2 = vsel %vm2099_vm4, %v2388_v44, 0.0  ;;  %v3301_v17 = vpack.c.bf16 %v4175_v16, %v4175_v16  ;;  %v3304_v22 = vpack.c.bf16 %v4181_v21, %v4181_v21  ;;  %v4245_v33 = vpop.f32.mrb[14].mxu1 }
 0x12d   : > { %v2144_v49 = vadd.f32 %v2143_v43, %v2142_v40  ;;  %v2535_v50 = vadd.f32 %v2534_v45, %v2533_v39  ;;  %v4248_v39 = vpop.f32.mrb[15].mxu1 }
 0x12e   : > { %v3454_v52 = vpop.f32.mrb[24].mxu0  ;;  %2038 = vst.msk [vmem:[%s3940_s29 + $0x110] sm:$0xf] %vm1969_vm3, %v3301_v17  ;;  %2041 = vst.msk [vmem:[%s3940_s29 + $0x11c] sm:$0xf] %vm1969_vm3, %v3304_v22 }
 0x12f   : > { %v3259_v56 = vpack.c.bf16 %v3454_v52, %v3454_v52  ;;  %v1042_v58 = vpop.f32.mrb[25].mxu0  ;;  %v2537_v60 = vadd.f32 %v2536_v54, %v2535_v50  ;;  %v2146_v62 = vadd.f32 %v2145_v55, %v2144_v49  ;;  %v2391_v9 = vmul.f32 %v3454_v52, %v3454_v52 }
 0x130   : > { %v3257_v61 = vpack.c.bf16 %v1042_v58, %v1042_v58  ;;  %v2147_v63 = vsel %vm2099_vm4, %v1042_v58, 0.0  ;;  %v3455_v0 = vpop.f32.mrb[26].mxu0  ;;  %v2389_v3 = vmul.f32 %v1042_v58, %v1042_v58  ;;  %v2151_v18 = vsel %vm2099_vm4, %v3454_v52, 0.0 }
 0x131   : > { %1996 = vst.msk [vmem:[%s3940_s29 + $0x68] sm:$0xf] %vm1969_vm3, %v3259_v56  ;;  %v3260_v4 = vpack.c.bf16 %v3455_v0, %v3455_v0  ;;  %v1045_v5 = vpop.f32.mrb[27].mxu0  ;;  %v2148_v6 = vadd.f32 %v2147_v63, %v2146_v62  ;;  %v2539_v7 = vadd.f32 %v2538_v2, %v2537_v60  ;;  %v2392_v19 = vmul.f32 %v3455_v0, %v3455_v0  ;;  %v4267_v2 = vpop.f32.mrb[16].mxu1 }
 0x132   : > { %1994 = vst.msk [vmem:[%s3940_s29 + $0x60] sm:$0xf] %vm1969_vm3, %v3257_v61  ;;  %v3258_v8 = vpack.c.bf16 %v1045_v5, %v1045_v5  ;;  %v2540_v10 = vsel %vm2099_vm4, %v2389_v3, 0.0  ;;  %v2149_v11 = vsel %vm2099_vm4, %v1045_v5, 0.0  ;;  %v2390_v13 = vmul.f32 %v1045_v5, %v1045_v5 }
 0x133   : > { %1997 = vst.msk [vmem:[%s3940_s29 + $0x6c] sm:$0xf] %vm1969_vm3, %v3260_v4  ;;  %v2541_v14 = vadd.f32 %v2540_v10, %v2539_v7  ;;  %v2150_v15 = vadd.f32 %v2149_v11, %v2148_v6  ;;  %v2544_v29 = vsel %vm2099_vm4, %v2391_v9, 0.0  ;;  %v2153_v30 = vsel %vm2099_vm4, %v3455_v0, 0.0  ;;  %v4271_v6 = vpop.f32.mrb[17].mxu1 }
 0x134   : > { %1995 = vst.msk [vmem:[%s3940_s29 + $0x64] sm:$0xf] %vm1969_vm3, %v3258_v8  ;;  %v2542_v20 = vsel %vm2099_vm4, %v2390_v13, 0.0  ;;  %v2546_v40 = vsel %vm2099_vm4, %v2392_v19, 0.0  ;;  %v3302_v60 = vpack.c.bf16 %v4184_v27, %v4184_v27  ;;  %v3307_v0 = vpack.c.bf16 %v4203_v48, %v4203_v48  ;;  %v4277_v11 = vpop.f32.mrb[18].mxu1 }
 0x135   : > { %v2152_v24 = vadd.f32 %v2151_v18, %v2150_v15  ;;  %v2543_v25 = vadd.f32 %v2542_v20, %v2541_v14  ;;  %5141 = vst [vmem:[#allocation11_spill] sm:$0xff] %v4277_v11  ;;  %v4280_v19 = vpop.f32.mrb[19].mxu1 }
 0x136   : > { %v3458_v26 = vpop.f32.mrb[28].mxu0  ;;  %2039 = vst.msk [vmem:[%s3940_s29 + $0x114] sm:$0xf] %vm1969_vm3, %v3302_v60  ;;  %2044 = vst.msk [vmem:[%s3940_s29 + $0x128] sm:$0xf] %vm1969_vm3, %v3307_v0 }
 0x137   : > { %v3263_v31 = vpack.c.bf16 %v3458_v26, %v3458_v26  ;;  %v1058_v32 = vpop.f32.mrb[29].mxu0  ;;  %v2545_v34 = vadd.f32 %v2544_v29, %v2543_v25  ;;  %v2154_v36 = vadd.f32 %v2153_v30, %v2152_v24  ;;  %v2395_v50 = vmul.f32 %v3458_v26, %v3458_v26 }
 0x138   : > { %v3261_v35 = vpack.c.bf16 %v1058_v32, %v1058_v32  ;;  %v2155_v37 = vsel %vm2099_vm4, %v1058_v32, 0.0  ;;  %v3459_v38 = vpop.f32.mrb[30].mxu0  ;;  %v2393_v42 = vmul.f32 %v1058_v32, %v1058_v32  ;;  %v2159_v61 = vsel %vm2099_vm4, %v3458_v26, 0.0 }
 0x139   : > { %2000 = vst.msk [vmem:[%s3940_s29 + $0x78] sm:$0xf] %vm1969_vm3, %v3263_v31  ;;  %v3264_v43 = vpack.c.bf16 %v3459_v38, %v3459_v38  ;;  %v1061_v44 = vpop.f32.mrb[31].mxu0  ;;  %v2156_v45 = vadd.f32 %v2155_v37, %v2154_v36  ;;  %v2547_v47 = vadd.f32 %v2546_v40, %v2545_v34  ;;  %v2396_v62 = vmul.f32 %v3459_v38, %v3459_v38 }
 0x13a   : > { %1998 = vst.msk [vmem:[%s3940_s29 + $0x70] sm:$0xf] %vm1969_vm3, %v3261_v35  ;;  %v3262_v49 = vpack.c.bf16 %v1061_v44, %v1061_v44  ;;  %v2548_v52 = vsel %vm2099_vm4, %v2393_v42, 0.0  ;;  %v2157_v54 = vsel %vm2099_vm4, %v1061_v44, 0.0  ;;  %v2394_v55 = vmul.f32 %v1061_v44, %v1061_v44 }
 0x13b   : > { %2001 = vst.msk [vmem:[%s3940_s29 + $0x7c] sm:$0xf] %vm1969_vm3, %v3264_v43  ;;  %v2549_v56 = vadd.f32 %v2548_v52, %v2547_v47  ;;  %v2158_v58 = vadd.f32 %v2157_v54, %v2156_v45  ;;  %v2552_v7 = vsel %vm2099_vm4, %v2395_v50, 0.0  ;;  %v2161_v8 = vsel %vm2099_vm4, %v3459_v38, 0.0  ;;  %v4299_v45 = vpop.f32.mrb[20].mxu1 }
 0x13c   : > { %1999 = vst.msk [vmem:[%s3940_s29 + $0x74] sm:$0xf] %vm1969_vm3, %v3262_v49  ;;  %v2550_v63 = vsel %vm2099_vm4, %v2394_v55, 0.0  ;;  %v2554_v20 = vsel %vm2099_vm4, %v2396_v62, 0.0  ;;  %v3305_v38 = vpack.c.bf16 %v4207_v53, %v4207_v53  ;;  %v3308_v44 = vpack.c.bf16 %v4213_v59, %v4213_v59  ;;  %5142 = vst [vmem:[#allocation12_spill] sm:$0xff] %v4299_v45  ;;  %v4303_v52 = vpop.f32.mrb[21].mxu1 }
 0x13d   : > { %v2160_v3 = vadd.f32 %v2159_v61, %v2158_v58  ;;  %v2551_v4 = vadd.f32 %v2550_v63, %v2549_v56  ;;  %5143 = vst [vmem:[#allocation13_spill] sm:$0xff] %v4303_v52  ;;  %v4309_v60 = vpop.f32.mrb[22].mxu1 }
 0x13e   : > { %v3462_v5 = vpop.f32.mrb[32].mxu0  ;;  %2042 = vst.msk [vmem:[%s3940_s29 + $0x120] sm:$0xf] %vm1969_vm3, %v3305_v38  ;;  %2045 = vst.msk [vmem:[%s3940_s29 + $0x12c] sm:$0xf] %vm1969_vm3, %v3308_v44 }
 0x13f   : > { %v3267_v9 = vpack.c.bf16 %v3462_v5, %v3462_v5  ;;  %v1074_v10 = vpop.f32.mrb[33].mxu0  ;;  %v2553_v13 = vadd.f32 %v2552_v7, %v2551_v4  ;;  %v2162_v15 = vadd.f32 %v2161_v8, %v2160_v3  ;;  %v2399_v31 = vmul.f32 %v3462_v5, %v3462_v5  ;;  %5144 = vst [vmem:[#allocation14_spill] sm:$0xff] %v4309_v60  ;;  %v4312_v4 = vpop.f32.mrb[23].mxu1 }
 0x140   : > { %v3265_v14 = vpack.c.bf16 %v1074_v10, %v1074_v10  ;;  %v2163_v17 = vsel %vm2099_vm4, %v1074_v10, 0.0  ;;  %v3463_v18 = vpop.f32.mrb[34].mxu0  ;;  %v2397_v22 = vmul.f32 %v1074_v10, %v1074_v10  ;;  %v2167_v40 = vsel %vm2099_vm4, %v3462_v5, 0.0 }
 0x141   : > { %2004 = vst.msk [vmem:[%s3940_s29 + $0x88] sm:$0xf] %vm1969_vm3, %v3267_v9  ;;  %v3268_v24 = vpack.c.bf16 %v3463_v18, %v3463_v18  ;;  %v1077_v25 = vpop.f32.mrb[35].mxu0  ;;  %v2164_v26 = vadd.f32 %v2163_v17, %v2162_v15  ;;  %v2555_v29 = vadd.f32 %v2554_v20, %v2553_v13  ;;  %v2400_v42 = vmul.f32 %v3463_v18, %v3463_v18 }
 0x142   : > { %2002 = vst.msk [vmem:[%s3940_s29 + $0x80] sm:$0xf] %vm1969_vm3, %v3265_v14  ;;  %v3266_v30 = vpack.c.bf16 %v1077_v25, %v1077_v25  ;;  %v2556_v32 = vsel %vm2099_vm4, %v2397_v22, 0.0  ;;  %v2165_v34 = vsel %vm2099_vm4, %v1077_v25, 0.0  ;;  %v2398_v35 = vmul.f32 %v1077_v25, %v1077_v25 }
 0x143   : > { %2005 = vst.msk [vmem:[%s3940_s29 + $0x8c] sm:$0xf] %vm1969_vm3, %v3268_v24  ;;  %v2557_v36 = vadd.f32 %v2556_v32, %v2555_v29  ;;  %v2166_v37 = vadd.f32 %v2165_v34, %v2164_v26  ;;  %v2560_v54 = vsel %vm2099_vm4, %v2399_v31, 0.0  ;;  %v2169_v55 = vsel %vm2099_vm4, %v3463_v18, 0.0  ;;  %v4331_v32 = vpop.f32.mrb[24].mxu1 }
 0x144   : > { %2003 = vst.msk [vmem:[%s3940_s29 + $0x84] sm:$0xf] %vm1969_vm3, %v3266_v30  ;;  %v2558_v43 = vsel %vm2099_vm4, %v2398_v35, 0.0  ;;  %v2562_v5 = vsel %vm2099_vm4, %v2400_v42, 0.0  ;;  %v3306_v25 = vpack.c.bf16 %v4216_v1, %v4216_v1  ;;  %v3311_v31 = vpack.c.bf16 %v4235_v23, %v4235_v23 }
 0x145   : > { %v2168_v47 = vadd.f32 %v2167_v40, %v2166_v37  ;;  %v2559_v49 = vadd.f32 %v2558_v43, %v2557_v36  ;;  %v4335_v37 = vpop.f32.mrb[25].mxu1 }
 0x146   : > { %v3466_v50 = vpop.f32.mrb[36].mxu0  ;;  %2043 = vst.msk [vmem:[%s3940_s29 + $0x124] sm:$0xf] %vm1969_vm3, %v3306_v25  ;;  %2048 = vst.msk [vmem:[%s3940_s29 + $0x138] sm:$0xf] %vm1969_vm3, %v3311_v31  ;;  %v4341_v44 = vpop.f32.mrb[26].mxu1 }
 0x147   : > { %v3271_v56 = vpack.c.bf16 %v3466_v50, %v3466_v50  ;;  %v1090_v58 = vpop.f32.mrb[37].mxu0  ;;  %v2561_v61 = vadd.f32 %v2560_v54, %v2559_v49  ;;  %v2170_v63 = vadd.f32 %v2169_v55, %v2168_v47  ;;  %v2403_v15 = vmul.f32 %v3466_v50, %v3466_v50 }
 0x148   : > { %v3269_v62 = vpack.c.bf16 %v1090_v58, %v1090_v58  ;;  %v2171_v0 = vsel %vm2099_vm4, %v1090_v58, 0.0  ;;  %v3467_v3 = vpop.f32.mrb[38].mxu0  ;;  %v2401_v7 = vmul.f32 %v1090_v58, %v1090_v58  ;;  %v2175_v26 = vsel %vm2099_vm4, %v3466_v50, 0.0 }
 0x149   : > { %2008 = vst.msk [vmem:[%s3940_s29 + $0x98] sm:$0xf] %vm1969_vm3, %v3271_v56  ;;  %v3272_v8 = vpack.c.bf16 %v3467_v3, %v3467_v3  ;;  %v1093_v9 = vpop.f32.mrb[39].mxu0  ;;  %v2172_v10 = vadd.f32 %v2171_v0, %v2170_v63  ;;  %v2563_v13 = vadd.f32 %v2562_v5, %v2561_v61  ;;  %v2404_v29 = vmul.f32 %v3467_v3, %v3467_v3  ;;  %v4344_v56 = vpop.f32.mrb[27].mxu1 }
 0x14a   : > { %2006 = vst.msk [vmem:[%s3940_s29 + $0x90] sm:$0xf] %vm1969_vm3, %v3269_v62  ;;  %v3270_v14 = vpack.c.bf16 %v1093_v9, %v1093_v9  ;;  %v2564_v17 = vsel %vm2099_vm4, %v2401_v7, 0.0  ;;  %v2173_v18 = vsel %vm2099_vm4, %v1093_v9, 0.0  ;;  %v2402_v20 = vmul.f32 %v1093_v9, %v1093_v9 }
 0x14b   : > { %2009 = vst.msk [vmem:[%s3940_s29 + $0x9c] sm:$0xf] %vm1969_vm3, %v3272_v8  ;;  %v2565_v22 = vadd.f32 %v2564_v17, %v2563_v13  ;;  %v2174_v24 = vadd.f32 %v2173_v18, %v2172_v10  ;;  %v2568_v38 = vsel %vm2099_vm4, %v2403_v15, 0.0  ;;  %v2177_v40 = vsel %vm2099_vm4, %v3467_v3, 0.0 }
 0x14c   : > { %2007 = vst.msk [vmem:[%s3940_s29 + $0x94] sm:$0xf] %vm1969_vm3, %v3270_v14  ;;  %v2566_v30 = vsel %vm2099_vm4, %v2402_v20, 0.0  ;;  %v2570_v58 = vsel %vm2099_vm4, %v2404_v29, 0.0  ;;  %v3309_v15 = vpack.c.bf16 %v4239_v28, %v4239_v28 }
 0x14d   : > { %v2176_v34 = vadd.f32 %v2175_v26, %v2174_v24  ;;  %v2567_v35 = vadd.f32 %v2566_v30, %v2565_v22  ;;  %v3312_v22 = vpack.c.bf16 %v4245_v33, %v4245_v33  ;;  %v4363_v24 = vpop.f32.mrb[28].mxu1 }
 0x14e   : > { %v3470_v36 = vpop.f32.mrb[40].mxu0  ;;  %2046 = vst.msk [vmem:[%s3940_s29 + $0x130] sm:$0xf] %vm1969_vm3, %v3309_v15  ;;  %v4367_v30 = vpop.f32.mrb[29].mxu1 }
 0x14f   : > { %v3275_v42 = vpack.c.bf16 %v3470_v36, %v3470_v36  ;;  %v1106_v43 = vpop.f32.mrb[41].mxu0  ;;  %v2569_v47 = vadd.f32 %v2568_v38, %v2567_v35  ;;  %v2178_v50 = vadd.f32 %v2177_v40, %v2176_v34  ;;  %v2407_v7 = vmul.f32 %v3470_v36, %v3470_v36  ;;  %2049 = vst.msk [vmem:[%s3940_s29 + $0x13c] sm:$0xf] %vm1969_vm3, %v3312_v22  ;;  %v4373_v38 = vpop.f32.mrb[30].mxu1 }
 0x150   : > { %v3273_v49 = vpack.c.bf16 %v1106_v43, %v1106_v43  ;;  %v2179_v54 = vsel %vm2099_vm4, %v1106_v43, 0.0  ;;  %v3471_v55 = vpop.f32.mrb[42].mxu0  ;;  %v2405_v61 = vmul.f32 %v1106_v43, %v1106_v43  ;;  %v2183_v17 = vsel %vm2099_vm4, %v3470_v36, 0.0 }
 0x151   : > { %2012 = vst.msk [vmem:[%s3940_s29 + $0xa8] sm:$0xf] %vm1969_vm3, %v3275_v42  ;;  %v3276_v62 = vpack.c.bf16 %v3471_v55, %v3471_v55  ;;  %v1109_v63 = vpop.f32.mrb[43].mxu0  ;;  %v2180_v0 = vadd.f32 %v2179_v54, %v2178_v50  ;;  %v2571_v3 = vadd.f32 %v2570_v58, %v2569_v47  ;;  %v2408_v18 = vmul.f32 %v3471_v55, %v3471_v55  ;;  %v4376_v50 = vpop.f32.mrb[31].mxu1 }
 0x152   : > { %2010 = vst.msk [vmem:[%s3940_s29 + $0xa0] sm:$0xf] %vm1969_vm3, %v3273_v49  ;;  %v3274_v5 = vpack.c.bf16 %v1109_v63, %v1109_v63  ;;  %v2572_v8 = vsel %vm2099_vm4, %v2405_v61, 0.0  ;;  %v2181_v9 = vsel %vm2099_vm4, %v1109_v63, 0.0  ;;  %v2406_v10 = vmul.f32 %v1109_v63, %v1109_v63 }
 0x153   : > { %2013 = vst.msk [vmem:[%s3940_s29 + $0xac] sm:$0xf] %vm1969_vm3, %v3276_v62  ;;  %v2573_v13 = vadd.f32 %v2572_v8, %v2571_v3  ;;  %v2182_v14 = vadd.f32 %v2181_v9, %v2180_v0  ;;  %v2576_v31 = vsel %vm2099_vm4, %v2407_v7, 0.0  ;;  %v2185_v34 = vsel %vm2099_vm4, %v3471_v55, 0.0 }
 0x154   : > { %2011 = vst.msk [vmem:[%s3940_s29 + $0xa4] sm:$0xf] %vm1969_vm3, %v3274_v5  ;;  %v2574_v20 = vsel %vm2099_vm4, %v2406_v10, 0.0  ;;  %v2578_v54 = vsel %vm2099_vm4, %v2408_v18, 0.0  ;;  %v3315_v18 = vpack.c.bf16 %v4267_v2, %v4267_v2 }
 0x155   : > { %v2184_v25 = vadd.f32 %v2183_v17, %v2182_v14  ;;  %v2575_v26 = vadd.f32 %v2574_v20, %v2573_v13  ;;  %v3310_v13 = vpack.c.bf16 %v4248_v39, %v4248_v39  ;;  %v4395_v20 = vpop.f32.mrb[32].mxu1 }
 0x156   : > { %v3474_v29 = vpop.f32.mrb[44].mxu0  ;;  %2052 = vst.msk [vmem:[%s3940_s29 + $0x148] sm:$0xf] %vm1969_vm3, %v3315_v18 }
 0x157   : > { %v3279_v35 = vpack.c.bf16 %v3474_v29, %v3474_v29  ;;  %v1122_v36 = vpop.f32.mrb[45].mxu0  ;;  %v2577_v40 = vadd.f32 %v2576_v31, %v2575_v26  ;;  %v2186_v43 = vadd.f32 %v2185_v34, %v2184_v25  ;;  %v2411_v3 = vmul.f32 %v3474_v29, %v3474_v29  ;;  %2047 = vst.msk [vmem:[%s3940_s29 + $0x134] sm:$0xf] %vm1969_vm3, %v3310_v13  ;;  %v4399_v31 = vpop.f32.mrb[33].mxu1 }
 0x158   : > { %v3277_v42 = vpack.c.bf16 %v1122_v36, %v1122_v36  ;;  %v2187_v47 = vsel %vm2099_vm4, %v1122_v36, 0.0  ;;  %v3475_v49 = vpop.f32.mrb[46].mxu0  ;;  %v2409_v55 = vmul.f32 %v1122_v36, %v1122_v36  ;;  %v2191_v14 = vsel %vm2099_vm4, %v3474_v29, 0.0 }
 0x159   : > { %2016 = vst.msk [vmem:[%s3940_s29 + $0xb8] sm:$0xf] %vm1969_vm3, %v3279_v35  ;;  %v3280_v58 = vpack.c.bf16 %v3475_v49, %v3475_v49  ;;  %v1125_v61 = vpop.f32.mrb[47].mxu0  ;;  %v2188_v62 = vadd.f32 %v2187_v47, %v2186_v43  ;;  %v2579_v63 = vadd.f32 %v2578_v54, %v2577_v40  ;;  %v2412_v15 = vmul.f32 %v3475_v49, %v3475_v49  ;;  %v4405_v40 = vpop.f32.mrb[34].mxu1 }
 0x15a   : > { %2014 = vst.msk [vmem:[%s3940_s29 + $0xb0] sm:$0xf] %vm1969_vm3, %v3277_v42  ;;  %v3278_v0 = vpack.c.bf16 %v1125_v61, %v1125_v61  ;;  %v2580_v5 = vsel %vm2099_vm4, %v2409_v55, 0.0  ;;  %v2189_v7 = vsel %vm2099_vm4, %v1125_v61, 0.0  ;;  %v2410_v8 = vmul.f32 %v1125_v61, %v1125_v61 }
 0x15b   : > { %2017 = vst.msk [vmem:[%s3940_s29 + $0xbc] sm:$0xf] %vm1969_vm3, %v3280_v58  ;;  %v2581_v9 = vadd.f32 %v2580_v5, %v2579_v63  ;;  %v2190_v10 = vadd.f32 %v2189_v7, %v2188_v62  ;;  %v2584_v34 = vsel %vm2099_vm4, %v2411_v3, 0.0  ;;  %v2193_v29 = vsel %vm2099_vm4, %v3475_v49, 0.0  ;;  %v4408_v58 = vpop.f32.mrb[35].mxu1 }
 0x15c   : > { %2015 = vst.msk [vmem:[%s3940_s29 + $0xb4] sm:$0xf] %vm1969_vm3, %v3278_v0  ;;  %v2582_v17 = vsel %vm2099_vm4, %v2410_v8, 0.0  ;;  %v2586_v61 = vsel %vm2099_vm4, %v2412_v15, 0.0  ;;  %v3313_v15 = vpack.c.bf16 %v4271_v6, %v4271_v6 }
 0x15d   : > { %v2192_v22 = vadd.f32 %v2191_v14, %v2190_v10  ;;  %v2583_v25 = vadd.f32 %v2582_v17, %v2581_v9 }
 0x15e   : > { %v3478_v26 = vpop.f32.mrb[48].mxu0  ;;  %2050 = vst.msk [vmem:[%s3940_s29 + $0x140] sm:$0xf] %vm1969_vm3, %v3313_v15 }
 0x15f   : > { %v3283_v35 = vpack.c.bf16 %v3478_v26, %v3478_v26  ;;  %v1138_v36 = vpop.f32.mrb[49].mxu0  ;;  %v2585_v42 = vadd.f32 %v2584_v34, %v2583_v25  ;;  %v2194_v47 = vadd.f32 %v2193_v29, %v2192_v22  ;;  %v2415_v7 = vmul.f32 %v3478_v26, %v3478_v26  ;;  %v4427_v34 = vpop.f32.mrb[36].mxu1 }
 0x160   : > { %v3281_v43 = vpack.c.bf16 %v1138_v36, %v1138_v36  ;;  %v2195_v54 = vsel %vm2099_vm4, %v1138_v36, 0.0  ;;  %v3479_v55 = vpop.f32.mrb[50].mxu0  ;;  %v2413_v49 = vmul.f32 %v1138_v36, %v1138_v36  ;;  %v2199_v17 = vsel %vm2099_vm4, %v3478_v26, 0.0 }
 0x161   : > { %2020 = vst.msk [vmem:[%s3940_s29 + $0xc8] sm:$0xf] %vm1969_vm3, %v3283_v35  ;;  %v3284_v62 = vpack.c.bf16 %v3479_v55, %v3479_v55  ;;  %v1141_v63 = vpop.f32.mrb[51].mxu0  ;;  %v2196_v0 = vadd.f32 %v2195_v54, %v2194_v47  ;;  %v2587_v3 = vadd.f32 %v2586_v61, %v2585_v42  ;;  %v2416_v18 = vmul.f32 %v3479_v55, %v3479_v55  ;;  %v4431_v42 = vpop.f32.mrb[37].mxu1 }
 0x162   : > { %2018 = vst.msk [vmem:[%s3940_s29 + $0xc0] sm:$0xf] %vm1969_vm3, %v3281_v43  ;;  %v3282_v5 = vpack.c.bf16 %v1141_v63, %v1141_v63  ;;  %v2588_v8 = vsel %vm2099_vm4, %v2413_v49, 0.0  ;;  %v2197_v9 = vsel %vm2099_vm4, %v1141_v63, 0.0  ;;  %v2414_v10 = vmul.f32 %v1141_v63, %v1141_v63  ;;  %v4437_v61 = vpop.f32.mrb[38].mxu1 }
 0x163   : > { %2021 = vst.msk [vmem:[%s3940_s29 + $0xcc] sm:$0xf] %vm1969_vm3, %v3284_v62  ;;  %v2589_v13 = vadd.f32 %v2588_v8, %v2587_v3  ;;  %v2198_v14 = vadd.f32 %v2197_v9, %v2196_v0  ;;  %v3316_v25 = vpack.c.bf16 %v4277_v11, %v4277_v11  ;;  %v2592_v43 = vsel %vm2099_vm4, %v2415_v7, 0.0 }
 0x164   : > { %2019 = vst.msk [vmem:[%s3940_s29 + $0xc4] sm:$0xf] %vm1969_vm3, %v3282_v5  ;;  %v2590_v22 = vsel %vm2099_vm4, %v2414_v10, 0.0  ;;  %v2201_v26 = vsel %vm2099_vm4, %v3479_v55, 0.0  ;;  %v4440_v5 = vpop.f32.mrb[39].mxu1  ;;  %v2594_v7 = vsel %vm2099_vm4, %v2416_v18, 0.0 }
 0x165   : > { %v2200_v29 = vadd.f32 %v2199_v17, %v2198_v14  ;;  %v2591_v35 = vadd.f32 %v2590_v22, %v2589_v13  ;;  %2053 = vst.msk [vmem:[%s3940_s29 + $0x14c] sm:$0xf] %vm1969_vm3, %v3316_v25 }
 0x166   : > { %v3482_v36 = vpop.f32.mrb[52].mxu0 }
 0x167   : > { %v3287_v47 = vpack.c.bf16 %v3482_v36, %v3482_v36  ;;  %v1154_v54 = vpop.f32.mrb[53].mxu0  ;;  %v2593_v49 = vadd.f32 %v2592_v43, %v2591_v35  ;;  %v2202_v63 = vadd.f32 %v2201_v26, %v2200_v29  ;;  %v2419_v15 = vmul.f32 %v3482_v36, %v3482_v36 }
 0x168   : > { %v3285_v62 = vpack.c.bf16 %v1154_v54, %v1154_v54  ;;  %v2203_v0 = vsel %vm2099_vm4, %v1154_v54, 0.0  ;;  %v3483_v3 = vpop.f32.mrb[54].mxu0  ;;  %v2417_v55 = vmul.f32 %v1154_v54, %v1154_v54  ;;  %v3314_v35 = vpack.c.bf16 %v4280_v19, %v4280_v19 }
 0x169   : > { %2024 = vst.msk [vmem:[%s3940_s29 + $0xd8] sm:$0xf] %vm1969_vm3, %v3287_v47  ;;  %v3288_v8 = vpack.c.bf16 %v3483_v3, %v3483_v3  ;;  %v1157_v9 = vpop.f32.mrb[55].mxu0  ;;  %v2204_v10 = vadd.f32 %v2203_v0, %v2202_v63  ;;  %v2595_v13 = vadd.f32 %v2594_v7, %v2593_v49  ;;  %v2207_v43 = vsel %vm2099_vm4, %v3482_v36, 0.0  ;;  %v4459_v49 = vpop.f32.mrb[40].mxu1 }
 0x16a   : > { %2022 = vst.msk [vmem:[%s3940_s29 + $0xd0] sm:$0xf] %vm1969_vm3, %v3285_v62  ;;  %v3286_v14 = vpack.c.bf16 %v1157_v9, %v1157_v9  ;;  %v2596_v17 = vsel %vm2099_vm4, %v2417_v55, 0.0  ;;  %v2205_v22 = vsel %vm2099_vm4, %v1157_v9, 0.0  ;;  %v2418_v25 = vmul.f32 %v1157_v9, %v1157_v9  ;;  %2051 = vst.msk [vmem:[%s3940_s29 + $0x144] sm:$0xf] %vm1969_vm3, %v3314_v35 }
 0x16b   : > { %2025 = vst.msk [vmem:[%s3940_s29 + $0xdc] sm:$0xf] %vm1969_vm3, %v3288_v8  ;;  %v2597_v18 = vadd.f32 %v2596_v17, %v2595_v13  ;;  %v2206_v29 = vadd.f32 %v2205_v22, %v2204_v10  ;;  %v2420_v26 = vmul.f32 %v3483_v3, %v3483_v3  ;;  %v3319_v54 = vpack.c.bf16 %v4299_v45, %v4299_v45  ;;  %v4463_v7 = vpop.f32.mrb[41].mxu1 }
 0x16c   : > { %2023 = vst.msk [vmem:[%s3940_s29 + $0xd4] sm:$0xf] %vm1969_vm3, %v3286_v14  ;;  %v2598_v47 = vsel %vm2099_vm4, %v2418_v25, 0.0  ;;  %v2600_v55 = vsel %vm2099_vm4, %v2419_v15, 0.0  ;;  %v2209_v36 = vsel %vm2099_vm4, %v3483_v3, 0.0  ;;  %v4469_v10 = vpop.f32.mrb[42].mxu1 }
 0x16d   : > { %v2208_v62 = vadd.f32 %v2207_v43, %v2206_v29  ;;  %v2599_v63 = vadd.f32 %v2598_v47, %v2597_v18  ;;  %2056 = vst.msk [vmem:[%s3940_s29 + $0x158] sm:$0xf] %vm1969_vm3, %v3319_v54  ;;  %v4472_v18 = vpop.f32.mrb[43].mxu1  ;;  %v2602_v15 = vsel %vm2099_vm4, %v2420_v26, 0.0 }
 0x16e   : > { %v3486_v0 = vpop.f32.mrb[56].mxu0 }
 0x16f   : > { %v3291_v8 = vpack.c.bf16 %v3486_v0, %v3486_v0  ;;  %v1170_v9 = vpop.f32.mrb[57].mxu0  ;;  %v2601_v13 = vadd.f32 %v2600_v55, %v2599_v63  ;;  %v2210_v17 = vadd.f32 %v2209_v36, %v2208_v62  ;;  %v2423_v63 = vmul.f32 %v3486_v0, %v3486_v0 }
 0x170   : > { %v3289_v14 = vpack.c.bf16 %v1170_v9, %v1170_v9  ;;  %v2211_v22 = vsel %vm2099_vm4, %v1170_v9, 0.0  ;;  %v3487_v25 = vpop.f32.mrb[58].mxu0  ;;  %v2421_v3 = vmul.f32 %v1170_v9, %v1170_v9  ;;  %v3317_v9 = vpack.c.bf16 %v4303_v52, %v4303_v52 }
 0x171   : > { %2028 = vst.msk [vmem:[%s3940_s29 + $0xe8] sm:$0xf] %vm1969_vm3, %v3291_v8  ;;  %v3292_v29 = vpack.c.bf16 %v3487_v25, %v3487_v25  ;;  %v1173_v35 = vpop.f32.mrb[59].mxu0  ;;  %v2212_v43 = vadd.f32 %v2211_v22, %v2210_v17  ;;  %v2603_v47 = vadd.f32 %v2602_v15, %v2601_v13  ;;  %v2215_v13 = vsel %vm2099_vm4, %v3486_v0, 0.0  ;;  %v4491_v15 = vpop.f32.mrb[44].mxu1 }
 0x172   : > { %2026 = vst.msk [vmem:[%s3940_s29 + $0xe0] sm:$0xf] %vm1969_vm3, %v3289_v14  ;;  %v3290_v54 = vpack.c.bf16 %v1173_v35, %v1173_v35  ;;  %v2604_v62 = vsel %vm2099_vm4, %v2421_v3, 0.0  ;;  %v2213_v55 = vsel %vm2099_vm4, %v1173_v35, 0.0  ;;  %v2422_v36 = vmul.f32 %v1173_v35, %v1173_v35  ;;  %2054 = vst.msk [vmem:[%s3940_s29 + $0x150] sm:$0xf] %vm1969_vm3, %v3317_v9 }
 0x173   : > { %2029 = vst.msk [vmem:[%s3940_s29 + $0xec] sm:$0xf] %vm1969_vm3, %v3292_v29  ;;  %v2605_v26 = vadd.f32 %v2604_v62, %v2603_v47  ;;  %v2214_v8 = vadd.f32 %v2213_v55, %v2212_v43  ;;  %v2424_v14 = vmul.f32 %v3487_v25, %v3487_v25  ;;  %v3320_v22 = vpack.c.bf16 %v4309_v60, %v4309_v60  ;;  %v4495_v43 = vpop.f32.mrb[45].mxu1 }
 0x174   : > { %2027 = vst.msk [vmem:[%s3940_s29 + $0xe4] sm:$0xf] %vm1969_vm3, %v3290_v54  ;;  %v2606_v17 = vsel %vm2099_vm4, %v2422_v36, 0.0  ;;  %v2608_v47 = vsel %vm2099_vm4, %v2423_v63, 0.0  ;;  %v2217_v0 = vsel %vm2099_vm4, %v3487_v25, 0.0  ;;  %v4501_v55 = vpop.f32.mrb[46].mxu1 }
 0x175   : > { %v2216_v3 = vadd.f32 %v2215_v13, %v2214_v8  ;;  %v2607_v29 = vadd.f32 %v2606_v17, %v2605_v26  ;;  %2057 = vst.msk [vmem:[%s3940_s29 + $0x15c] sm:$0xf] %vm1969_vm3, %v3320_v22  ;;  %v4504_v17 = vpop.f32.mrb[47].mxu1  ;;  %v2610_v63 = vsel %vm2099_vm4, %v2424_v14, 0.0 }
 0x176   : > { %v3490_v35 = vpop.f32.mrb[60].mxu0 }
 0x177   : > { %v3295_v54 = vpack.c.bf16 %v3490_v35, %v3490_v35  ;;  %v1186_v62 = vpop.f32.mrb[61].mxu0  ;;  %v2609_v36 = vadd.f32 %v2608_v47, %v2607_v29  ;;  %v2218_v26 = vadd.f32 %v2217_v0, %v2216_v3  ;;  %v2427_v52 = vmul.f32 %v3490_v35, %v3490_v35 }
 0x178   : > { %v3293_v8 = vpack.c.bf16 %v1186_v62, %v1186_v62  ;;  %v2219_v13 = vsel %vm2099_vm4, %v1186_v62, 0.0  ;;  %v3491_v9 = vpop.f32.mrb[62].mxu0  ;;  %v2425_v25 = vmul.f32 %v1186_v62, %v1186_v62  ;;  %v2429_v62 = vmul.f32 %v4143_v46, %v4143_v46 }
 0x179   : > { %2032 = vst.msk [vmem:[%s3940_s29 + $0xf8] sm:$0xf] %vm1969_vm3, %v3295_v54  ;;  %v3296_v60 = vpack.c.bf16 %v3491_v9, %v3491_v9  ;;  %v1189_v45 = vpop.f32.mrb[63].mxu0  ;;  %v2220_v22 = vadd.f32 %v2219_v13, %v2218_v26  ;;  %v2611_v29 = vadd.f32 %v2610_v63, %v2609_v36  ;;  %v3318_v36 = vpack.c.bf16 %v4312_v4, %v4312_v4 }
 0x17a   : > { %2030 = vst.msk [vmem:[%s3940_s29 + $0xf0] sm:$0xf] %vm1969_vm3, %v3293_v8  ;;  %v3294_v47 = vpack.c.bf16 %v1189_v45, %v1189_v45  ;;  %v2612_v3 = vsel %vm2099_vm4, %v2425_v25, 0.0  ;;  %v2221_v0 = vsel %vm2099_vm4, %v1189_v45, 0.0  ;;  %v2426_v11 = vmul.f32 %v1189_v45, %v1189_v45  ;;  %v4525_v45 = vpop.f32.mrb[48].mxu1 }
 0x17b   : > { %2033 = vst.msk [vmem:[%s3940_s29 + $0xfc] sm:$0xf] %vm1969_vm3, %v3296_v60  ;;  %v2613_v14 = vadd.f32 %v2612_v3, %v2611_v29  ;;  %v2222_v54 = vadd.f32 %v2221_v0, %v2220_v22  ;;  %v2223_v8 = vsel %vm2099_vm4, %v3490_v35, 0.0  ;;  %v2428_v26 = vmul.f32 %v3491_v9, %v3491_v9  ;;  %2055 = vst.msk [vmem:[%s3940_s29 + $0x154] sm:$0xf] %vm1969_vm3, %v3318_v36  ;;  %v4529_v22 = vpop.f32.mrb[49].mxu1 }
 0x17c   : > { %2031 = vst.msk [vmem:[%s3940_s29 + $0xf4] sm:$0xf] %vm1969_vm3, %v3294_v47  ;;  %v2614_v13 = vsel %vm2099_vm4, %v2426_v11, 0.0  ;;  %v3323_v60 = vpack.c.bf16 %v4331_v32, %v4331_v32  ;;  %v2616_v29 = vsel %vm2099_vm4, %v2427_v52, 0.0  ;;  %v2225_v47 = vsel %vm2099_vm4, %v3491_v9, 0.0  ;;  %v4539_v3 = vpop.f32.mrb[50].mxu1 }
 0x17d   : > { %v2224_v63 = vadd.f32 %v2223_v8, %v2222_v54  ;;  %v2615_v25 = vadd.f32 %v2614_v13, %v2613_v14  ;;  %v2227_v11 = vsel %vm2099_vm4, %v4143_v46, 0.0  ;;  %v3321_v35 = vpack.c.bf16 %v4335_v37, %v4335_v37  ;;  %v4543_v52 = vpop.f32.mrb[51].mxu1 }
 0x17e   : > { %2060 = vst.msk [vmem:[%s3940_s29 + $0x168] sm:$0xf] %vm1969_vm3, %v3323_v60  ;;  %v3324_v54 = vpack.c.bf16 %v4341_v44, %v4341_v44  ;;  %v2618_v9 = vsel %vm2099_vm4, %v2428_v26, 0.0  ;;  %v2620_v36 = vsel %vm2099_vm4, %v2429_v62, 0.0  ;;  %v2430_v46 = vmul.f32 %v4152_v57, %v4152_v57 }
 0x17f   : > { %v2226_v0 = vadd.f32 %v2225_v47, %v2224_v63  ;;  %v2617_v14 = vadd.f32 %v2616_v29, %v2615_v25  ;;  %2058 = vst.msk [vmem:[%s3940_s29 + $0x160] sm:$0xf] %vm1969_vm3, %v3321_v35  ;;  %v3322_v8 = vpack.c.bf16 %v4344_v56, %v4344_v56  ;;  %v2431_v63 = vmul.f32 %v4139_v41, %v4139_v41 }
 0x180   : > { %2061 = vst.msk [vmem:[%s3940_s29 + $0x16c] sm:$0xf] %vm1969_vm3, %v3324_v54  ;;  %v2229_v62 = vsel %vm2099_vm4, %v4152_v57, 0.0  ;;  %v3327_v26 = vpack.c.bf16 %v4363_v24, %v4363_v24  ;;  %v2231_v25 = vsel %vm2099_vm4, %v4139_v41, 0.0  ;;  %v2432_v35 = vmul.f32 %v4147_v51, %v4147_v51  ;;  %v4576_v41 = vpop.f32.mrb[52].mxu1 }
 0x181   : > { %v2619_v13 = vadd.f32 %v2618_v9, %v2617_v14  ;;  %v2228_v60 = vadd.f32 %v2227_v11, %v2226_v0  ;;  %2059 = vst.msk [vmem:[%s3940_s29 + $0x164] sm:$0xf] %vm1969_vm3, %v3322_v8  ;;  %v3325_v11 = vpack.c.bf16 %v4367_v30, %v4367_v30  ;;  %v2622_v0 = vsel %vm2099_vm4, %v2430_v46, 0.0 }
 0x182   : > { %v2433_v57 = vmul.f32 %v4175_v16, %v4175_v16  ;;  %2064 = vst.msk [vmem:[%s3940_s29 + $0x178] sm:$0xf] %vm1969_vm3, %v3327_v26  ;;  %v3328_v14 = vpack.c.bf16 %v4373_v38, %v4373_v38  ;;  %v2624_v8 = vsel %vm2099_vm4, %v2431_v63, 0.0  ;;  %v2233_v46 = vsel %vm2099_vm4, %v4147_v51, 0.0 }
 0x183   : > { %v2621_v29 = vadd.f32 %v2620_v36, %v2619_v13  ;;  %v2230_v47 = vadd.f32 %v2229_v62, %v2228_v60  ;;  %2062 = vst.msk [vmem:[%s3940_s29 + $0x170] sm:$0xf] %vm1969_vm3, %v3325_v11  ;;  %v4580_v36 = vpop.f32.mrb[53].mxu1  ;;  %v2235_v13 = vsel %vm2099_vm4, %v4175_v16, 0.0  ;;  %v3326_v60 = vpack.c.bf16 %v4376_v50, %v4376_v50 }
 0x184   : > { %2065 = vst.msk [vmem:[%s3940_s29 + $0x17c] sm:$0xf] %vm1969_vm3, %v3328_v14  ;;  %v4591_v62 = vpop.f32.mrb[54].mxu1  ;;  %v3331_v63 = vpack.c.bf16 %v4395_v20, %v4395_v20  ;;  %v2626_v51 = vsel %vm2099_vm4, %v2432_v35, 0.0  ;;  %v2434_v16 = vmul.f32 %v4184_v27, %v4184_v27  ;;  %v3329_v11 = vpack.c.bf16 %v4399_v31, %v4399_v31 }
 0x185   : > { %v2232_v54 = vadd.f32 %v2231_v25, %v2230_v47  ;;  %v2623_v9 = vadd.f32 %v2622_v0, %v2621_v29  ;;  %v4595_v29 = vpop.f32.mrb[55].mxu1  ;;  %v2628_v47 = vsel %vm2099_vm4, %v2433_v57, 0.0  ;;  %2063 = vst.msk [vmem:[%s3940_s29 + $0x174] sm:$0xf] %vm1969_vm3, %v3326_v60  ;;  %v2237_v35 = vsel %vm2099_vm4, %v4184_v27, 0.0 }
 0x186   : > { %2068 = vst.msk [vmem:[%s3940_s29 + $0x188] sm:$0xf] %vm1969_vm3, %v3331_v63  ;;  %2066 = vst.msk [vmem:[%s3940_s29 + $0x180] sm:$0xf] %vm1969_vm3, %v3329_v11  ;;  %v3332_v57 = vpack.c.bf16 %v4405_v40, %v4405_v40  ;;  %v2436_v60 = vmul.f32 %v4181_v21, %v4181_v21  ;;  %v2437_v27 = vmul.f32 %v4207_v53, %v4207_v53 }
 0x187   : > { %v2625_v26 = vadd.f32 %v2624_v8, %v2623_v9  ;;  %v2234_v25 = vadd.f32 %v2233_v46, %v2232_v54  ;;  %v2435_v54 = vmul.f32 %v4171_v12, %v4171_v12  ;;  %v2239_v9 = vsel %vm2099_vm4, %v4171_v12, 0.0  ;;  %v4628_v12 = vpop.f32.mrb[56].mxu1 }
 0x188   : > { %2069 = vst.msk [vmem:[%s3940_s29 + $0x18c] sm:$0xf] %vm1969_vm3, %v3332_v57 }
 0x189   : > { %v2236_v0 = vadd.f32 %v2235_v13, %v2234_v25  ;;  %v2627_v14 = vadd.f32 %v2626_v51, %v2625_v26  ;;  %v3330_v13 = vpack.c.bf16 %v4408_v58, %v4408_v58  ;;  %v2630_v26 = vsel %vm2099_vm4, %v2434_v16, 0.0 }
 0x18a   : > { %v3335_v25 = vpack.c.bf16 %v4427_v34, %v4427_v34  ;;  %v2632_v11 = vsel %vm2099_vm4, %v2435_v54, 0.0  ;;  %v2241_v16 = vsel %vm2099_vm4, %v4181_v21, 0.0  ;;  %v3336_v54 = vpack.c.bf16 %v4437_v61, %v4437_v61 }
 0x18b   : > { %v2629_v8 = vadd.f32 %v2628_v47, %v2627_v14  ;;  %v2238_v46 = vadd.f32 %v2237_v35, %v2236_v0  ;;  %2067 = vst.msk [vmem:[%s3940_s29 + $0x184] sm:$0xf] %vm1969_vm3, %v3330_v13  ;;  %v4632_v47 = vpop.f32.mrb[57].mxu1  ;;  %v2243_v0 = vsel %vm2099_vm4, %v4207_v53, 0.0  ;;  %v3333_v14 = vpack.c.bf16 %v4431_v42, %v4431_v42 }
 0x18c   : > { %2072 = vst.msk [vmem:[%s3940_s29 + $0x198] sm:$0xf] %vm1969_vm3, %v3335_v25  ;;  %v4643_v35 = vpop.f32.mrb[58].mxu1  ;;  %v2634_v21 = vsel %vm2099_vm4, %v2436_v60, 0.0  ;;  %v2438_v53 = vmul.f32 %v4216_v1, %v4216_v1  ;;  %v3334_v13 = vpack.c.bf16 %v4440_v5, %v4440_v5  ;;  %2073 = vst.msk [vmem:[%s3940_s29 + $0x19c] sm:$0xf] %vm1969_vm3, %v3336_v54 }
 0x18d   : > { %v2240_v63 = vadd.f32 %v2239_v9, %v2238_v46  ;;  %v2631_v51 = vadd.f32 %v2630_v26, %v2629_v8  ;;  %v4647_v8 = vpop.f32.mrb[59].mxu1  ;;  %v2636_v46 = vsel %vm2099_vm4, %v2437_v27, 0.0  ;;  %2070 = vst.msk [vmem:[%s3940_s29 + $0x190] sm:$0xf] %vm1969_vm3, %v3333_v14  ;;  %v2245_v60 = vsel %vm2099_vm4, %v4216_v1, 0.0 }
 0x18e   : > { %2071 = vst.msk [vmem:[%s3940_s29 + $0x194] sm:$0xf] %vm1969_vm3, %v3334_v13  ;;  %v3339_v27 = vpack.c.bf16 %v4459_v49, %v4459_v49  ;;  %v2440_v14 = vmul.f32 %v4213_v59, %v4213_v59  ;;  %v2441_v1 = vmul.f32 %v4239_v28, %v4239_v28 }
 0x18f   : > { %v2633_v57 = vadd.f32 %v2632_v11, %v2631_v51  ;;  %v2242_v9 = vadd.f32 %v2241_v16, %v2240_v63  ;;  %v2439_v63 = vmul.f32 %v4203_v48, %v4203_v48  ;;  %v2247_v51 = vsel %vm2099_vm4, %v4203_v48, 0.0  ;;  %v4680_v48 = vpop.f32.mrb[60].mxu1 }
 0x190   : > { %2076 = vst.msk [vmem:[%s3940_s29 + $0x1a8] sm:$0xf] %vm1969_vm3, %v3339_v27 }
 0x191   : > { %v2244_v26 = vadd.f32 %v2243_v0, %v2242_v9  ;;  %v2635_v25 = vadd.f32 %v2634_v21, %v2633_v57  ;;  %v3337_v0 = vpack.c.bf16 %v4463_v7, %v4463_v7  ;;  %v2638_v57 = vsel %vm2099_vm4, %v2438_v53, 0.0 }
 0x192   : > { %v3340_v9 = vpack.c.bf16 %v4469_v10, %v4469_v10  ;;  %v2640_v13 = vsel %vm2099_vm4, %v2439_v63, 0.0  ;;  %v2249_v53 = vsel %vm2099_vm4, %v4213_v59, 0.0  ;;  %v3343_v63 = vpack.c.bf16 %v4491_v15, %v4491_v15 }
 0x193   : > { %v2637_v11 = vadd.f32 %v2636_v46, %v2635_v25  ;;  %v2246_v16 = vadd.f32 %v2245_v60, %v2244_v26  ;;  %2074 = vst.msk [vmem:[%s3940_s29 + $0x1a0] sm:$0xf] %vm1969_vm3, %v3337_v0  ;;  %v4684_v46 = vpop.f32.mrb[61].mxu1  ;;  %v2251_v26 = vsel %vm2099_vm4, %v4239_v28, 0.0  ;;  %v3338_v25 = vpack.c.bf16 %v4472_v18, %v4472_v18 }
 0x194   : > { %2077 = vst.msk [vmem:[%s3940_s29 + $0x1ac] sm:$0xf] %vm1969_vm3, %v3340_v9  ;;  %v4695_v60 = vpop.f32.mrb[62].mxu1  ;;  %v2642_v59 = vsel %vm2099_vm4, %v2440_v14, 0.0  ;;  %v2442_v28 = vmul.f32 %v4248_v39, %v4248_v39  ;;  %v3341_v0 = vpack.c.bf16 %v4495_v43, %v4495_v43  ;;  %2080 = vst.msk [vmem:[%s3940_s29 + $0x1b8] sm:$0xf] %vm1969_vm3, %v3343_v63 }
 0x195   : > { %v2248_v54 = vadd.f32 %v2247_v51, %v2246_v16  ;;  %v2639_v21 = vadd.f32 %v2638_v57, %v2637_v11  ;;  %v4699_v11 = vpop.f32.mrb[63].mxu1  ;;  %v2644_v16 = vsel %vm2099_vm4, %v2441_v1, 0.0  ;;  %2075 = vst.msk [vmem:[%s3940_s29 + $0x1a4] sm:$0xf] %vm1969_vm3, %v3338_v25  ;;  %v2253_v14 = vsel %vm2099_vm4, %v4248_v39, 0.0 }
 0x196   : > { %2078 = vst.msk [vmem:[%s3940_s29 + $0x1b0] sm:$0xf] %vm1969_vm3, %v3341_v0  ;;  %v3344_v1 = vpack.c.bf16 %v4501_v55, %v4501_v55  ;;  %v2444_v25 = vmul.f32 %v4245_v33, %v4245_v33  ;;  %v2445_v39 = vmul.f32 %v4271_v6, %v4271_v6  ;;  %v3345_v0 = vpack.c.bf16 %v4529_v22, %v4529_v22 }
 0x197   : > { %v2641_v27 = vadd.f32 %v2640_v13, %v2639_v21  ;;  %v2250_v51 = vadd.f32 %v2249_v53, %v2248_v54  ;;  %v2443_v54 = vmul.f32 %v4235_v23, %v4235_v23  ;;  %v2255_v21 = vsel %vm2099_vm4, %v4235_v23, 0.0 }
 0x198   : > { %2081 = vst.msk [vmem:[%s3940_s29 + $0x1bc] sm:$0xf] %vm1969_vm3, %v3344_v1  ;;  %v2650_v1 = vsel %vm2099_vm4, %v2444_v25, 0.0  ;;  %2082 = vst.msk [vmem:[%s3940_s29 + $0x1c0] sm:$0xf] %vm1969_vm3, %v3345_v0  ;;  %v3351_v25 = vpack.c.bf16 %v4576_v41, %v4576_v41  ;;  %v3352_v0 = vpack.c.bf16 %v4591_v62, %v4591_v62 }
 0x199   : > { %v2252_v57 = vadd.f32 %v2251_v26, %v2250_v51  ;;  %v2643_v9 = vadd.f32 %v2642_v59, %v2641_v27  ;;  %v3342_v26 = vpack.c.bf16 %v4504_v17, %v4504_v17  ;;  %v2646_v27 = vsel %vm2099_vm4, %v2442_v28, 0.0 }
 0x19a   : > { %v3347_v51 = vpack.c.bf16 %v4525_v45, %v4525_v45  ;;  %v2648_v59 = vsel %vm2099_vm4, %v2443_v54, 0.0  ;;  %v2259_v28 = vsel %vm2099_vm4, %v4271_v6, 0.0  ;;  %v2652_v54 = vsel %vm2099_vm4, %v2445_v39, 0.0  ;;  %2088 = vst.msk [vmem:[%s3940_s29 + $0x1d8] sm:$0xf] %vm1969_vm3, %v3351_v25 }
 0x19b   : > { %v2645_v13 = vadd.f32 %v2644_v16, %v2643_v9  ;;  %v2254_v53 = vadd.f32 %v2253_v14, %v2252_v57  ;;  %2079 = vst.msk [vmem:[%s3940_s29 + $0x1b4] sm:$0xf] %vm1969_vm3, %v3342_v26  ;;  %v2257_v16 = vsel %vm2099_vm4, %v4245_v33, 0.0  ;;  %v3348_v14 = vpack.c.bf16 %v4539_v3, %v4539_v3  ;;  %2089 = vst.msk [vmem:[%s3940_s29 + $0x1dc] sm:$0xf] %vm1969_vm3, %v3352_v0 }
 0x19c   : > { %2084 = vst.msk [vmem:[%s3940_s29 + $0x1c8] sm:$0xf] %vm1969_vm3, %v3347_v51  ;;  %v2446_v33 = vmul.f32 %v4280_v19, %v4280_v19  ;;  %v3346_v6 = vpack.c.bf16 %v4543_v52, %v4543_v52  ;;  %v2261_v26 = vsel %vm2099_vm4, %v4280_v19, 0.0  ;;  %v5146_v19 = vld [vmem:[#allocation13_spill] sm:$0xff]  ;;  %v3353_v25 = vpack.c.bf16 %v4632_v47, %v4632_v47 }
 0x19d   : > { %v2256_v23 = vadd.f32 %v2255_v21, %v2254_v53  ;;  %v2647_v63 = vadd.f32 %v2646_v27, %v2645_v13  ;;  %2085 = vst.msk [vmem:[%s3940_s29 + $0x1cc] sm:$0xf] %vm1969_vm3, %v3348_v14  ;;  %v2447_v53 = vmul.f32 %v4267_v2, %v4267_v2  ;;  %v2263_v27 = vsel %vm2099_vm4, %v4267_v2, 0.0 }
 0x19e   : > { %2083 = vst.msk [vmem:[%s3940_s29 + $0x1c4] sm:$0xf] %vm1969_vm3, %v3346_v6  ;;  %2090 = vst.msk [vmem:[%s3940_s29 + $0x1e0] sm:$0xf] %vm1969_vm3, %v3353_v25  ;;  %v3354_v0 = vpack.c.bf16 %v4647_v8, %v4647_v8  ;;  %v3360_v25 = vpack.c.bf16 %v4695_v60, %v4695_v60 }
 0x19f   : > { %v2649_v57 = vadd.f32 %v2648_v59, %v2647_v63  ;;  %v2258_v9 = vadd.f32 %v2257_v16, %v2256_v23  ;;  %v3349_v23 = vpack.c.bf16 %v4580_v36, %v4580_v36  ;;  %v5145_v63 = vld [vmem:[#allocation11_spill] sm:$0xff]  ;;  %v2654_v16 = vsel %vm2099_vm4, %v2446_v33, 0.0 }
 0x1a0   : > { %v2448_v59 = vmul.f32 %v5145_v63, %v5145_v63  ;;  %v2265_v14 = vsel %vm2099_vm4, %v5145_v63, 0.0  ;;  %v2269_v63 = vsel %vm2099_vm4, %v4312_v4, 0.0  ;;  %2091 = vst.msk [vmem:[%s3940_s29 + $0x1e4] sm:$0xf] %vm1969_vm3, %v3354_v0  ;;  %2097 = vst.msk [vmem:[%s3940_s29 + $0x1fc] sm:$0xf] %vm1969_vm3, %v3360_v25  ;;  %v2459_v25 = vmul.f32 %v4363_v24, %v4363_v24 }
 0x1a1   : > { %v2260_v21 = vadd.f32 %v2259_v28, %v2258_v9  ;;  %v2651_v13 = vadd.f32 %v2650_v1, %v2649_v57  ;;  %v2449_v28 = vmul.f32 %v5146_v19, %v5146_v19  ;;  %2086 = vst.msk [vmem:[%s3940_s29 + $0x1d0] sm:$0xf] %vm1969_vm3, %v3349_v23  ;;  %v2656_v9 = vsel %vm2099_vm4, %v2447_v53, 0.0 }
 0x1a2   : > { %v2267_v1 = vsel %vm2099_vm4, %v5146_v19, 0.0  ;;  %v2279_v0 = vsel %vm2099_vm4, %v4331_v32, 0.0 }
 0x1a3   : > { %v2653_v39 = vadd.f32 %v2652_v54, %v2651_v13  ;;  %v2262_v51 = vadd.f32 %v2261_v26, %v2260_v21  ;;  %v3350_v54 = vpack.c.bf16 %v4595_v29, %v4595_v29  ;;  %v3355_v21 = vpack.c.bf16 %v4628_v12, %v4628_v12 }
 0x1a4   : > { %v2658_v13 = vsel %vm2099_vm4, %v2448_v59, 0.0  ;;  %v2660_v53 = vsel %vm2099_vm4, %v2449_v28, 0.0  ;;  %v2450_v26 = vmul.f32 %v4312_v4, %v4312_v4  ;;  %v3356_v59 = vpack.c.bf16 %v4643_v35, %v4643_v35 }
 0x1a5   : > { %v2264_v2 = vadd.f32 %v2263_v27, %v2262_v51  ;;  %v2655_v57 = vadd.f32 %v2654_v16, %v2653_v39  ;;  %2087 = vst.msk [vmem:[%s3940_s29 + $0x1d4] sm:$0xf] %vm1969_vm3, %v3350_v54  ;;  %2092 = vst.msk [vmem:[%s3940_s29 + $0x1e8] sm:$0xf] %vm1969_vm3, %v3355_v21  ;;  %v5147_v51 = vld [vmem:[#allocation12_spill] sm:$0xff]  ;;  %v2453_v4 = vmul.f32 %v4335_v37, %v4335_v37  ;;  %v2275_v21 = vsel %vm2099_vm4, %v4335_v37, 0.0 }
 0x1a6   : > { %v2451_v23 = vmul.f32 %v5147_v51, %v5147_v51  ;;  %v2271_v16 = vsel %vm2099_vm4, %v5147_v51, 0.0  ;;  %2093 = vst.msk [vmem:[%s3940_s29 + $0x1ec] sm:$0xf] %vm1969_vm3, %v3356_v59  ;;  %v2454_v51 = vmul.f32 %v4344_v56, %v4344_v56  ;;  %v3358_v37 = vpack.c.bf16 %v4699_v11, %v4699_v11 }
 0x1a7   : > { %v2657_v33 = vadd.f32 %v2656_v9, %v2655_v57  ;;  %v2266_v6 = vadd.f32 %v2265_v14, %v2264_v2  ;;  %v5148_v2 = vld [vmem:[#allocation14_spill] sm:$0xff]  ;;  %v2662_v9 = vsel %vm2099_vm4, %v2450_v26, 0.0  ;;  %v3359_v14 = vpack.c.bf16 %v4680_v48, %v4680_v48 }
 0x1a8   : > { %v2452_v57 = vmul.f32 %v5148_v2, %v5148_v2  ;;  %v2455_v59 = vmul.f32 %v4331_v32, %v4331_v32  ;;  %2095 = vst.msk [vmem:[%s3940_s29 + $0x1f4] sm:$0xf] %vm1969_vm3, %v3358_v37 }
 0x1a9   : > { %v2268_v27 = vadd.f32 %v2267_v1, %v2266_v6  ;;  %v2659_v39 = vadd.f32 %v2658_v13, %v2657_v33  ;;  %v2664_v33 = vsel %vm2099_vm4, %v2451_v23, 0.0  ;;  %v2273_v6 = vsel %vm2099_vm4, %v5148_v2, 0.0  ;;  %2096 = vst.msk [vmem:[%s3940_s29 + $0x1f8] sm:$0xf] %vm1969_vm3, %v3359_v14 }
 0x1aa   : > { %v3357_v13 = vpack.c.bf16 %v4684_v46, %v4684_v46  ;;  %v2456_v2 = vmul.f32 %v4341_v44, %v4341_v44 }
 0x1ab   : > { %v2661_v19 = vadd.f32 %v2660_v53, %v2659_v39  ;;  %v2270_v28 = vadd.f32 %v2269_v63, %v2268_v27  ;;  %v2666_v27 = vsel %vm2099_vm4, %v2452_v57, 0.0  ;;  %v2668_v39 = vsel %vm2099_vm4, %v2453_v4, 0.0 }
 0x1ac   : > { %2094 = vst.msk [vmem:[%s3940_s29 + $0x1f0] sm:$0xf] %vm1969_vm3, %v3357_v13  ;;  %v2670_v57 = vsel %vm2099_vm4, %v2454_v51, 0.0  ;;  %v2458_v13 = vmul.f32 %v4376_v50, %v4376_v50  ;;  %v2460_v51 = vmul.f32 %v4373_v38, %v4373_v38 }
 0x1ad   : > { %v2272_v1 = vadd.f32 %v2271_v16, %v2270_v28  ;;  %v2663_v54 = vadd.f32 %v2662_v9, %v2661_v19  ;;  %v2277_v16 = vsel %vm2099_vm4, %v4344_v56, 0.0  ;;  %v2457_v9 = vmul.f32 %v4367_v30, %v4367_v30 }
 0x1ae   : > { %v2281_v56 = vsel %vm2099_vm4, %v4341_v44, 0.0  ;;  %v2285_v44 = vsel %vm2099_vm4, %v4376_v50, 0.0  ;;  %v2678_v37 = vsel %vm2099_vm4, %v2458_v13, 0.0  ;;  %v2289_v50 = vsel %vm2099_vm4, %v4373_v38, 0.0 }
 0x1af   : > { %v2665_v53 = vadd.f32 %v2664_v33, %v2663_v54  ;;  %v2274_v26 = vadd.f32 %v2273_v6, %v2272_v1  ;;  %v2672_v1 = vsel %vm2099_vm4, %v2455_v59, 0.0  ;;  %v2283_v54 = vsel %vm2099_vm4, %v4367_v30, 0.0 }
 0x1b0   : > { %v2674_v6 = vsel %vm2099_vm4, %v2456_v2, 0.0  ;;  %v2287_v30 = vsel %vm2099_vm4, %v4363_v24, 0.0  ;;  %v2293_v38 = vsel %vm2099_vm4, %v4408_v58, 0.0 }
 0x1b1   : > { %v2276_v23 = vadd.f32 %v2275_v21, %v2274_v26  ;;  %v2667_v63 = vadd.f32 %v2666_v27, %v2665_v53  ;;  %v2676_v21 = vsel %vm2099_vm4, %v2457_v9, 0.0 }
 0x1b3   : > { %v2669_v19 = vadd.f32 %v2668_v39, %v2667_v63  ;;  %v2278_v28 = vadd.f32 %v2277_v16, %v2276_v23  ;;  %v2461_v23 = vmul.f32 %v4399_v31, %v4399_v31  ;;  %v2680_v16 = vsel %vm2099_vm4, %v2459_v25, 0.0 }
 0x1b5   : > { %v2280_v4 = vadd.f32 %v2279_v0, %v2278_v28  ;;  %v2671_v14 = vadd.f32 %v2670_v57, %v2669_v19  ;;  %v2291_v19 = vsel %vm2099_vm4, %v4399_v31, 0.0  ;;  %v2682_v0 = vsel %vm2099_vm4, %v2460_v51, 0.0 }
 0x1b6   : > { %v2684_v2 = vsel %vm2099_vm4, %v2461_v23, 0.0  ;;  %v2462_v57 = vmul.f32 %v4408_v58, %v4408_v58  ;;  %v2295_v31 = vsel %vm2099_vm4, %v4395_v20, 0.0  ;;  %v2297_v58 = vsel %vm2099_vm4, %v4405_v40, 0.0 }
 0x1b7   : > { %v2673_v33 = vadd.f32 %v2672_v1, %v2671_v14  ;;  %v2282_v32 = vadd.f32 %v2281_v56, %v2280_v4  ;;  %v2463_v14 = vmul.f32 %v4395_v20, %v4395_v20  ;;  %v2467_v51 = vmul.f32 %v4427_v34, %v4427_v34 }
 0x1b9   : > { %v2284_v53 = vadd.f32 %v2283_v54, %v2282_v32  ;;  %v2675_v26 = vadd.f32 %v2674_v6, %v2673_v33  ;;  %v2464_v54 = vmul.f32 %v4405_v40, %v4405_v40  ;;  %v2686_v33 = vsel %vm2099_vm4, %v2462_v57, 0.0 }
 0x1ba   : > { %v2465_v32 = vmul.f32 %v4431_v42, %v4431_v42  ;;  %v2688_v13 = vsel %vm2099_vm4, %v2463_v14, 0.0  ;;  %v2301_v40 = vsel %vm2099_vm4, %v4440_v5, 0.0 }
 0x1bb   : > { %v2677_v27 = vadd.f32 %v2676_v21, %v2675_v26  ;;  %v2286_v39 = vadd.f32 %v2285_v44, %v2284_v53  ;;  %v2299_v53 = vsel %vm2099_vm4, %v4431_v42, 0.0  ;;  %v2690_v25 = vsel %vm2099_vm4, %v2464_v54, 0.0 }
 0x1bc   : > { %v2692_v44 = vsel %vm2099_vm4, %v2465_v32, 0.0  ;;  %v2303_v42 = vsel %vm2099_vm4, %v4427_v34, 0.0 }
 0x1bd   : > { %v2288_v63 = vadd.f32 %v2287_v30, %v2286_v39  ;;  %v2679_v59 = vadd.f32 %v2678_v37, %v2677_v27  ;;  %v2466_v27 = vmul.f32 %v4440_v5, %v4440_v5  ;;  %v2305_v5 = vsel %vm2099_vm4, %v4437_v61, 0.0 }
 0x1bf   : > { %v2681_v28 = vadd.f32 %v2680_v16, %v2679_v59  ;;  %v2290_v24 = vadd.f32 %v2289_v50, %v2288_v63  ;;  %v2468_v63 = vmul.f32 %v4437_v61, %v4437_v61  ;;  %v2694_v59 = vsel %vm2099_vm4, %v2466_v27, 0.0 }
 0x1c0   : > { %v2469_v16 = vmul.f32 %v4463_v7, %v4463_v7  ;;  %v2309_v61 = vsel %vm2099_vm4, %v4472_v18, 0.0  ;;  %v2475_v27 = vmul.f32 %v4491_v15, %v4491_v15 }
 0x1c1   : > { %v2292_v9 = vadd.f32 %v2291_v19, %v2290_v24  ;;  %v2683_v4 = vadd.f32 %v2682_v0, %v2681_v28  ;;  %v2696_v28 = vsel %vm2099_vm4, %v2467_v51, 0.0  ;;  %v2307_v24 = vsel %vm2099_vm4, %v4463_v7, 0.0 }
 0x1c2   : > { %v2700_v57 = vsel %vm2099_vm4, %v2469_v16, 0.0  ;;  %v2311_v7 = vsel %vm2099_vm4, %v4459_v49, 0.0  ;;  %v2476_v51 = vmul.f32 %v4501_v55, %v4501_v55 }
 0x1c3   : > { %v2685_v1 = vadd.f32 %v2684_v2, %v2683_v4  ;;  %v2294_v56 = vadd.f32 %v2293_v38, %v2292_v9  ;;  %v2698_v2 = vsel %vm2099_vm4, %v2468_v63, 0.0  ;;  %v2470_v9 = vmul.f32 %v4472_v18, %v4472_v18 }
 0x1c4   : > { %v2471_v38 = vmul.f32 %v4459_v49, %v4459_v49  ;;  %v2313_v18 = vsel %vm2099_vm4, %v4469_v10, 0.0  ;;  %v2712_v63 = vsel %vm2099_vm4, %v2475_v27, 0.0 }
 0x1c5   : > { %v2296_v6 = vadd.f32 %v2295_v31, %v2294_v56  ;;  %v2687_v21 = vadd.f32 %v2686_v33, %v2685_v1  ;;  %v2472_v31 = vmul.f32 %v4469_v10, %v4469_v10  ;;  %v2702_v54 = vsel %vm2099_vm4, %v2470_v9, 0.0 }
 0x1c6   : > { %v2473_v33 = vmul.f32 %v4495_v43, %v4495_v43  ;;  %v2317_v10 = vsel %vm2099_vm4, %v4504_v17, 0.0 }
 0x1c7   : > { %v2689_v26 = vadd.f32 %v2688_v13, %v2687_v21  ;;  %v2298_v20 = vadd.f32 %v2297_v58, %v2296_v6  ;;  %v2704_v21 = vsel %vm2099_vm4, %v2471_v38, 0.0  ;;  %v2315_v13 = vsel %vm2099_vm4, %v4495_v43, 0.0 }
 0x1c8   : > { %v2319_v43 = vsel %vm2099_vm4, %v4491_v15, 0.0 }
 0x1c9   : > { %v2300_v39 = vadd.f32 %v2299_v53, %v2298_v20  ;;  %v2691_v30 = vadd.f32 %v2690_v25, %v2689_v26  ;;  %v2706_v53 = vsel %vm2099_vm4, %v2472_v31, 0.0  ;;  %v2708_v26 = vsel %vm2099_vm4, %v2473_v33, 0.0 }
 0x1ca   : > { %v2474_v20 = vmul.f32 %v4504_v17, %v4504_v17  ;;  %v2321_v17 = vsel %vm2099_vm4, %v4501_v55, 0.0  ;;  %v2325_v55 = vsel %vm2099_vm4, %v4543_v52, 0.0 }
 0x1cb   : > { %v2693_v37 = vadd.f32 %v2692_v44, %v2691_v30  ;;  %v2302_v23 = vadd.f32 %v2301_v40, %v2300_v39 }
 0x1cc   : > { %v2710_v40 = vsel %vm2099_vm4, %v2474_v20, 0.0 }
 0x1cd   : > { %v2304_v50 = vadd.f32 %v2303_v42, %v2302_v23  ;;  %v2695_v19 = vadd.f32 %v2694_v59, %v2693_v37  ;;  %v2477_v37 = vmul.f32 %v4529_v22, %v4529_v22  ;;  %v2323_v59 = vsel %vm2099_vm4, %v4529_v22, 0.0 }
 0x1ce   : > { %v2327_v22 = vsel %vm2099_vm4, %v4525_v45, 0.0 }
 0x1cf   : > { %v2697_v0 = vadd.f32 %v2696_v28, %v2695_v19  ;;  %v2306_v34 = vadd.f32 %v2305_v5, %v2304_v50  ;;  %v2714_v50 = vsel %vm2099_vm4, %v2476_v51, 0.0  ;;  %v2716_v19 = vsel %vm2099_vm4, %v2477_v37, 0.0 }
 0x1d0   : > { %v2478_v28 = vmul.f32 %v4543_v52, %v4543_v52  ;;  %v2329_v52 = vsel %vm2099_vm4, %v4539_v3, 0.0  ;;  %v2487_v51 = vmul.f32 %v4628_v12, %v4628_v12 }
 0x1d1   : > { %v2308_v4 = vadd.f32 %v2307_v24, %v2306_v34  ;;  %v2699_v14 = vadd.f32 %v2698_v2, %v2697_v0  ;;  %v2479_v0 = vmul.f32 %v4525_v45, %v4525_v45 }
 0x1d2   : > { %v2718_v9 = vsel %vm2099_vm4, %v2478_v28, 0.0 }
 0x1d3   : > { %v2701_v1 = vadd.f32 %v2700_v57, %v2699_v14  ;;  %v2310_v56 = vadd.f32 %v2309_v61, %v2308_v4  ;;  %v2480_v57 = vmul.f32 %v4539_v3, %v4539_v3  ;;  %v2481_v4 = vmul.f32 %v4580_v36, %v4580_v36 }
 0x1d4   : > { %v2720_v61 = vsel %vm2099_vm4, %v2479_v0, 0.0  ;;  %v2333_v3 = vsel %vm2099_vm4, %v4595_v29, 0.0 }
 0x1d5   : > { %v2312_v32 = vadd.f32 %v2311_v7, %v2310_v56  ;;  %v2703_v6 = vadd.f32 %v2702_v54, %v2701_v1  ;;  %v2331_v1 = vsel %vm2099_vm4, %v4580_v36, 0.0  ;;  %v2722_v7 = vsel %vm2099_vm4, %v2480_v57, 0.0 }
 0x1d6   : > { %v2724_v31 = vsel %vm2099_vm4, %v2481_v4, 0.0  ;;  %v2482_v54 = vmul.f32 %v4595_v29, %v4595_v29  ;;  %v2335_v36 = vsel %vm2099_vm4, %v4576_v41, 0.0  ;;  %v2337_v29 = vsel %vm2099_vm4, %v4591_v62, 0.0 }
 0x1d7   : > { %v2705_v58 = vadd.f32 %v2704_v21, %v2703_v6  ;;  %v2314_v49 = vadd.f32 %v2313_v18, %v2312_v32  ;;  %v2483_v6 = vmul.f32 %v4576_v41, %v4576_v41 }
 0x1d9   : > { %v2316_v25 = vadd.f32 %v2315_v13, %v2314_v49  ;;  %v2707_v44 = vadd.f32 %v2706_v53, %v2705_v58  ;;  %v2484_v13 = vmul.f32 %v4591_v62, %v4591_v62  ;;  %v2726_v58 = vsel %vm2099_vm4, %v2482_v54, 0.0 }
 0x1da   : > { %v2485_v49 = vmul.f32 %v4632_v47, %v4632_v47  ;;  %v2728_v20 = vsel %vm2099_vm4, %v2483_v6, 0.0  ;;  %v2341_v62 = vsel %vm2099_vm4, %v4647_v8, 0.0 }
 0x1db   : > { %v2709_v39 = vadd.f32 %v2708_v26, %v2707_v44  ;;  %v2318_v30 = vadd.f32 %v2317_v10, %v2316_v25  ;;  %v2339_v25 = vsel %vm2099_vm4, %v4632_v47, 0.0  ;;  %v2730_v27 = vsel %vm2099_vm4, %v2484_v13, 0.0 }
 0x1dc   : > { %v2732_v10 = vsel %vm2099_vm4, %v2485_v49, 0.0  ;;  %v2343_v47 = vsel %vm2099_vm4, %v4628_v12, 0.0 }
 0x1dd   : > { %v2320_v23 = vadd.f32 %v2319_v43, %v2318_v30  ;;  %v2711_v42 = vadd.f32 %v2710_v40, %v2709_v39  ;;  %v2486_v39 = vmul.f32 %v4647_v8, %v4647_v8  ;;  %v2345_v8 = vsel %vm2099_vm4, %v4643_v35, 0.0 }
 0x1df   : > { %v2713_v16 = vadd.f32 %v2712_v63, %v2711_v42  ;;  %v2322_v15 = vadd.f32 %v2321_v17, %v2320_v23  ;;  %v2488_v23 = vmul.f32 %v4643_v35, %v4643_v35  ;;  %v2734_v42 = vsel %vm2099_vm4, %v2486_v39, 0.0 }
 0x1e0   : > { %v2489_v63 = vmul.f32 %v4684_v46, %v4684_v46  ;;  %v2349_v35 = vsel %vm2099_vm4, %v4699_v11, 0.0 }
 0x1e1   : > { %v2324_v5 = vadd.f32 %v2323_v59, %v2322_v15  ;;  %v2715_v24 = vadd.f32 %v2714_v50, %v2713_v16  ;;  %v2736_v16 = vsel %vm2099_vm4, %v2487_v51, 0.0  ;;  %v2347_v15 = vsel %vm2099_vm4, %v4684_v46, 0.0 }
 0x1e2   : > { %v2740_v28 = vsel %vm2099_vm4, %v2489_v63, 0.0  ;;  %v2351_v46 = vsel %vm2099_vm4, %v4680_v48, 0.0 }
 0x1e3   : > { %v2717_v34 = vadd.f32 %v2716_v19, %v2715_v24  ;;  %v2326_v2 = vadd.f32 %v2325_v55, %v2324_v5  ;;  %v2738_v19 = vsel %vm2099_vm4, %v2488_v23, 0.0  ;;  %v2490_v5 = vmul.f32 %v4699_v11, %v4699_v11 }
 0x1e4   : > { %v2491_v55 = vmul.f32 %v4680_v48, %v4680_v48 }
 0x1e5   : > { %v2328_v14 = vadd.f32 %v2327_v22, %v2326_v2  ;;  %v2719_v38 = vadd.f32 %v2718_v9, %v2717_v34  ;;  %v2492_v22 = vmul.f32 %v4695_v60, %v4695_v60  ;;  %v2742_v57 = vsel %vm2099_vm4, %v2490_v5, 0.0 }
 0x1e7   : > { %v2721_v56 = vadd.f32 %v2720_v61, %v2719_v38  ;;  %v2330_v45 = vadd.f32 %v2329_v52, %v2328_v14  ;;  %v2744_v14 = vsel %vm2099_vm4, %v2491_v55, 0.0  ;;  %v2353_v38 = vsel %vm2099_vm4, %v4695_v60, 0.0 }
 0x1e8   : > { %v2746_v11 = vsel %vm2099_vm4, %v2492_v22, 0.0 }
 0x1e9   : > { %v2332_v33 = vadd.f32 %v2331_v1, %v2330_v45  ;;  %v2723_v32 = vadd.f32 %v2722_v7, %v2721_v56 }
 0x1eb   : > { %v2725_v21 = vadd.f32 %v2724_v31, %v2723_v32  ;;  %v2334_v18 = vadd.f32 %v2333_v3, %v2332_v33  ;;  %v2098_v3 = vld [vmem:[#allocation2] sm:$0x1] }
 0x1ed   : > { %v2336_v53 = vadd.f32 %v2335_v36, %v2334_v18  ;;  %v2727_v26 = vadd.f32 %v2726_v58, %v2725_v21  ;;  %v2364_v36 = vld [vmem:[#allocation3] sm:$0x1] }
 0x1ef   : > { %v2729_v44 = vadd.f32 %v2728_v20, %v2727_v26  ;;  %v2338_v41 = vadd.f32 %v2337_v29, %v2336_v53 }
 0x1f1   : > { %v2340_v30 = vadd.f32 %v2339_v25, %v2338_v41  ;;  %v2731_v43 = vadd.f32 %v2730_v27, %v2729_v44 }
 0x1f3   : > { %v2733_v40 = vadd.f32 %v2732_v10, %v2731_v43  ;;  %v2342_v37 = vadd.f32 %v2341_v62, %v2340_v30 }
 0x1f5   : > { %v2344_v17 = vadd.f32 %v2343_v47, %v2342_v37  ;;  %v2735_v59 = vadd.f32 %v2734_v42, %v2733_v40 }
 0x1f7   : > { %v2737_v50 = vadd.f32 %v2736_v16, %v2735_v59  ;;  %v2346_v12 = vadd.f32 %v2345_v8, %v2344_v17 }
 0x1f9   : > { %v2348_v24 = vadd.f32 %v2347_v15, %v2346_v12  ;;  %v2739_v0 = vadd.f32 %v2738_v19, %v2737_v50 }
 0x1fb   : > { %v2741_v34 = vadd.f32 %v2740_v28, %v2739_v0  ;;  %v2350_v2 = vadd.f32 %v2349_v35, %v2348_v24 }
 0x1fd   : > { %v2352_v9 = vadd.f32 %v2351_v46, %v2350_v2  ;;  %v2743_v4 = vadd.f32 %v2742_v57, %v2741_v34 }
 0x1ff   : > { %v2354_v61 = vadd.f32 %v2353_v38, %v2352_v9  ;;  %v2745_v52 = vadd.f32 %v2744_v14, %v2743_v4 }
 0x201   : > { %v2355_v1 = vrot.slane %v2354_v61, 4  ;;  %v2747_v56 = vadd.f32 %v2746_v11, %v2745_v52 }
 0x203   : > { %v2356_v45 = vadd.f32 %v2355_v1, %v2354_v61  ;;  %v2748_v48 = vrot.slane %v2747_v56, 4 }
 0x205   : > { %v2357_v7 = vrot.slane %v2356_v45, 2  ;;  %v2749_v31 = vadd.f32 %v2748_v48, %v2747_v56 }
 0x207   : > { %v2358_v54 = vadd.f32 %v2357_v7, %v2356_v45  ;;  %v2750_v33 = vrot.slane %v2749_v31, 2 }
 0x209   : > { %v2359_v32 = vrot.slane %v2358_v54, 1  ;;  %v2751_v6 = vadd.f32 %v2750_v33, %v2749_v31 }
 0x20b   : > { %v2360_v21 = vadd.f32 %v2359_v32, %v2358_v54  ;;  %v2752_v18 = vrot.slane %v2751_v6, 1  ;;  %2759 = sbr.rel (%p3224_p0) target bundleno = 538 (0x21a), region = 36 }
 0x20d   : > { %v2361_v60 = vadd.f32 %v2360_v21, %v2098_v3  ;;  %v2753_v13 = vadd.f32 %v2752_v18, %v2751_v6 }
 0x20f   : > { %2363 = vst.msk [vmem:[#allocation2] sm:$0x1] %vm2362_vm5, %v2361_v60  ;;  %v2754_v58 = vadd.f32 %v2753_v13, %v2364_v36 }
 0x211   : > { %2755 = vst.msk [vmem:[#allocation3] sm:$0x1] %vm2362_vm5, %v2754_v58 }
 0x216   : > { %v3225_v49 = vld [vmem:[#allocation2] ss:$0 sm:$0xff] }
 0x217   : > { %2767 = vst.msk [vmem:[%s3942_s30] sm:$0xff] %vm2099_vm4, %v3225_v49 }
 0x218   : > { %v3226_v53 = vld [vmem:[#allocation3] ss:$0 sm:$0xff] }
 0x219   : > { %2775 = vst.msk [vmem:[%s3944_s26] sm:$0xff] %vm2099_vm4, %v3226_v53 }
 0x21a PF: > { %s3229_s8 = sshll.u32 %s3815_s19, 7  ;;  %s2808_s12 = sshll.u32 %s3942_s30, 4  ;;  %s2809_s12 = int_to_ptr.vmem [resolvable:$true] %s2808_s12 }
 0x21b   : > { %s5049_s18 = scalar_lea.hbm %s5127_s3, %s3229_s8  ;;  %s2784_s13 = scalar_lea.sflag [#allocation5], %s3927_s6 }
 0x21c   : > { %s3701_s14 = scalar_lea.vmem %s2809_s12, 128  ;;  %s3830_s23 = smov [#allocation4]  }
 0x21d   : > { %p3702_p1 = scmp.ne.s32.totalorder %s2809_s12, %s3701_s14  ;;  %s3705_s24 = sshll.u32 %s3830_s23, 4  ;;  %s3706_s24 = int_to_ptr.vmem [resolvable:$false] %s3705_s24 }
 0x21e   : > { %s3707_s29 = scalar_lea.vmem %s3706_s24, 256  ;;  %p3708_p5 = scmp.lt.s32.totalorder %s2809_s12, %s3706_s24 }
 0x21f   : > { %p3703_p2 = pnand %p3702_p1, %p3906_p3  ;;  %p3709_p6 = scmp.lt.s32.totalorder %s3707_s29, %s3701_s14 }
 0x221   : > { %p3704_p4 = pneg %p3703_p2  ;;  %p3710_p7 = por %p3709_p6, %p3708_p5 }
 0x223   : > { %p3711_p8 = pnand %p3710_p7, %p3704_p4 }
 0x225   : > { %3714 = shalt.err (!%p3711_p8)
}
 0x226   : > { %s3715_s30 = scalar_lea.hbm %s5049_s18, 128  ;;  %s3719_s10 = scalar_lea.hbm %s5127_s3, 256 }
 0x227   : > { %p3716_p10 = scmp.ne.s32.totalorder %s5049_s18, %s3715_s30  ;;  %p3720_p13 = scmp.lt.u32.totalorder %s5049_s18, %s5127_s3 }
 0x228   : > { %p3721_p0 = scmp.lt.u32.totalorder %s3719_s10, %s3715_s30  ;;  %p3723_p2 = scmp.lt.u32.totalorder %s3715_s30, %s5049_s18 }
 0x229   : > { %p3717_p11 = pnand %p3716_p10, %p3906_p3 }
 0x22a   : > { %p3722_p1 = por %p3721_p0, %p3720_p13 }
 0x22b   : > { %p3718_p12 = pneg %p3717_p11 }
 0x22c   : > { %p3724_p4 = por %p3723_p2, %p3722_p1 }
 0x22e   : > { %p3725_p5 = pnand %p3724_p4, %p3718_p12 }
 0x230   : > { %3728 = shalt.err (!%p3725_p5)
}
 0x231   : > { %3560 = dma.vmem_to_hbm [thread:$0]  (%p3906_p3), %s2809_s12, 128, %s5049_s18, %s2784_s13  }
 0x232   : > { %s5075_s29 = scalar_lea.hbm %s5128_s4, %s3229_s8  ;;  %s2821_s7 = sshll.u32 %s3944_s26, 4  ;;  %s2822_s7 = int_to_ptr.vmem [resolvable:$true] %s2821_s7 }
 0x233   : > { %s2789_s30 = scalar_lea.sflag [#allocation7], %s3927_s6  ;;  %s3729_s9 = scalar_lea.vmem %s2822_s7, 128 }
 0x234   : > { %p3730_p6 = scmp.ne.s32.totalorder %s2822_s7, %s3729_s9  ;;  %s3831_s10 = smov [#allocation6]  }
 0x235   : > { %s3733_s11 = sshll.u32 %s3831_s10, 4  ;;  %s3734_s11 = int_to_ptr.vmem [resolvable:$false] %s3733_s11 }
 0x236   : > { %p3731_p7 = pnand %p3730_p6, %p3906_p3  ;;  %s3735_s23 = scalar_lea.vmem %s3734_s11, 256 }
 0x237   : > { %p3736_p10 = scmp.lt.s32.totalorder %s2822_s7, %s3734_s11  ;;  %p3737_p11 = scmp.lt.s32.totalorder %s3735_s23, %s3729_s9 }
 0x238   : > { %p3732_p8 = pneg %p3731_p7 }
 0x239   : > { %p3738_p12 = por %p3737_p11, %p3736_p10 }
 0x23b   : > { %p3739_p13 = pnand %p3738_p12, %p3732_p8 }
 0x23d   : > { %3742 = shalt.err (!%p3739_p13)
}
 0x23e   : > { %s3743_s19 = scalar_lea.hbm %s5075_s29, 128  ;;  %s3747_s8 = scalar_lea.hbm %s5128_s4, 256 }
 0x23f   : > { %p3744_p0 = scmp.ne.s32.totalorder %s5075_s29, %s3743_s19  ;;  %p3748_p4 = scmp.lt.u32.totalorder %s5075_s29, %s5128_s4 }
 0x240   : > { %p3749_p5 = scmp.lt.u32.totalorder %s3747_s8, %s3743_s19  ;;  %p3751_p7 = scmp.lt.u32.totalorder %s3743_s19, %s5075_s29 }
 0x241   : > { %p3745_p1 = pnand %p3744_p0, %p3906_p3 }
 0x242   : > { %p3750_p6 = por %p3749_p5, %p3748_p4 }
 0x243   : > { %p3746_p2 = pneg %p3745_p1 }
 0x244   : > { %p3752_p8 = por %p3751_p7, %p3750_p6 }
 0x246   : > { %p3753_p10 = pnand %p3752_p8, %p3746_p2 }
 0x248   : > { %3756 = shalt.err (!%p3753_p10)
}
 0x249   : > { %3561 = dma.vmem_to_hbm [thread:$0]  (%p3906_p3), %s2822_s7, 128, %s5075_s29, %s2789_s30  }
 0x24a PF: > { %p3571_p11 = scmp.ge.s32.totalorder %s3827_s22, 2  ;;  %s2843_s13 = sand.u32 1, %s3799_s15  }
 0x24b   : > { %s2844_s14 = scalar_lea.sflag [#allocation5], %s2843_s13 }
 0x24c   : > { %p3565_p12 = pnand %p3571_p11, %p3916_p9 }
 0x24e   : > { %3790 = dma.done.wait (!%p3565_p12), %s2844_s14, 128  }
 0x24f   : > { %3792 = vsyncadd (!%p3565_p12), %s2844_s14, 4294967168  ;;  %s2853_s24 = scalar_lea.sflag [#allocation7], %s2843_s13 }
 0x250   : > { %3794 = dma.done.wait (!%p3565_p12), %s2853_s24, 128  }
 0x251   : > { %3796 = vsyncadd (!%p3565_p12), %s2853_s24, 4294967168  ;;  %s21_s22 = sadd.s32 1, %s3827_s22   ;;  %s5149_s27 = sld [smem:[#allocation10_spill]] }
 0x252   : > { %p18_p13 = scmp.ge.s32.totalorder %s21_s22, 10   ;;  %s5150_s15 = smov %s3803_s16 }
 0x253   : > { %s5151_s16 = smov %s3807_s17  ;;  %s5152_s17 = smov %s3924_s5 }
 0x254   : > { %s5153_s18 = smov %s3819_s20  ;;  %s5154_s19 = smov %s3823_s21 }
 0x255   : > { %s5155_s20 = smov %s5158_s25  ;;  %20 = sbr.rel (!%p18_p13) target bundleno = 7 (0x7), region = 100 }
 0x257   : > { %s5156_s21 = smov %s5149_s27 }
 0x25c   :  { %2858 = vsyncpa [#allocation5], 1 }
 0x25d   :  { %2860 = vsyncpa [#allocation5 + $0x1], 1 }
 0x25e   :  { %2861 = vsyncpa [#allocation7], 1 }
 0x25f   :  { %2863 = vsyncpa [#allocation7 + $0x1], 1 }

</bundles_post_ra>
